<compile_context>
chip_gen: v6e
topology: v6e:2x2x1
jax: 0.10.0
libtpu: 0.0.40
codegen_flags: <defaults>
</compile_context>

<pallas_src>
import jax
import jax.numpy as jnp
from jax.experimental import pallas as pl
from jax.experimental.pallas import tpu as pltpu

GP = 128       # lane-padded width of each conv-channel group (kernel_num -> 128)
NLP = 128      # lane-padded width of the classifier output (num_labels -> 128)
NEG_INF = -1e30


def _bert_cnn_kernel(h_ref, wf_ref, b1_ref, b2_ref, wc1_ref, wc2_ref, bc_ref,
                     out_ref, f1_ref, f2_ref, ac_ref):
    j = pl.program_id(1)                 # sequence-chunk index (reduction axis)
    nj = pl.num_programs(1)
    tb, cl, D = h_ref.shape
    gp = f1_ref.shape[1]

    @pl.when(j == 0)
    def _init():
        # ReLU outputs are >= 0, so 0 is a neutral init for the running max.
        f1_ref[...] = jnp.zeros_like(f1_ref)
        f2_ref[...] = jnp.zeros_like(f2_ref)
        ac_ref[...] = jnp.zeros_like(ac_ref)

    # One fused MXU pass for this sequence chunk:
    #   (tb*cl, D) bf16 @ (D, 3*GP) bf16 -> f32.
    # Reshape BEFORE the bf16 cast so the f32 (8,128)-tiled layout merge of the
    # leading dims stays copy-free (cl is a multiple of 8 or the full L).
    h = h_ref[...].reshape(tb * cl, D).astype(jnp.bfloat16)
    s = jnp.dot(h, wf_ref[...], preferred_element_type=jnp.float32)

    # Lane-broadcastable chunk-position index (tb, cl, 1) -- no full int32 tile.
    pos = jax.lax.broadcasted_iota(jnp.int32, (tb, cl, 1), 1)

    # ---- conv k=1: bias + relu + running max over chunk positions ------------
    g1 = jnp.maximum(s[:, 0:gp] + b1_ref[...], 0.0)
    f1_ref[...] = jnp.maximum(f1_ref[...],
                              jnp.max(g1.reshape(tb, cl, gp), axis=1))

    # ---- conv k=2: out[l] = a[l] + b[l+1], evaluated at position p = l+1 -----
    a = s[:, gp:2 * gp]
    bpart = s[:, 2 * gp:3 * gp]
    a_prev = pltpu.roll(a, shift=1, axis=0)                  # row p -> a[p-1] (XLU)
    g2 = jnp.maximum(a_prev + bpart + b2_ref[...], 0.0).reshape(tb, cl, gp)
    # Chunk-position 0 of every batch row picked up a wrapped/foreign row from
    # the roll; mask it (ReLU >= 0 keeps it neutral for the max-pool).
    g2 = jnp.where(pos >= 1, g2, 0.0)
    f2_ref[...] = jnp.maximum(f2_ref[...], jnp.max(g2, axis=1))

    # Row extractions as masked reductions (no sublane squeeze / relayout risk):
    a3 = a.reshape(tb, cl, gp)
    b3 = bpart.reshape(tb, cl, gp)
    a_last = jnp.max(jnp.where(pos == cl - 1, a3, -jnp.inf), axis=1)   # (tb, gp)
    b_first = jnp.max(jnp.where(pos == 0, b3, -jnp.inf), axis=1)       # (tb, gp)

    # Chunk boundary: position 0 of this chunk pairs with the a[] row carried
    # from the previous chunk (valid only from the second chunk onward).
    @pl.when(j >= 1)
    def _boundary():
        g2_0 = jnp.maximum(ac_ref[...] + b_first + b2_ref[...], 0.0)
        f2_ref[...] = jnp.maximum(f2_ref[...], g2_0)

    # Carry the last a[] row of this chunk for the next chunk's boundary term.
    ac_ref[...] = a_last

    # ---- classifier + softmax on the final chunk (dropout = identity) --------
    @pl.when(j == nj - 1)
    def _finalize():
        logits = (jnp.dot(f1_ref[...].astype(jnp.bfloat16), wc1_ref[...],
                          preferred_element_type=jnp.float32)
                  + jnp.dot(f2_ref[...].astype(jnp.bfloat16), wc2_ref[...],
                            preferred_element_type=jnp.float32)
                  + bc_ref[...])
        # Padded label columns carry a -1e30 f32 bias -> exp underflows to 0,
        # so they never contribute to the softmax denominator.
        m = jnp.max(logits, axis=1, keepdims=True)
        e = jnp.exp(logits - m)
        out_ref[...] = e / jnp.sum(e, axis=1, keepdims=True)


def _pick_seq_chunk(L, limit=256):
    """Largest divisor of L that is a multiple of 8 and <= limit, else L."""
    best = None
    for d in range(8, min(L, limit) + 1, 8):
        if L % d == 0:
            best = d
    return best if best is not None else L


def _pick_batch_tile(B, limit):
    """Largest divisor of B that is a multiple of 8 and <= limit, else B."""
    best = None
    for d in range(8, min(B, max(limit, 8)) + 1, 8):
        if B % d == 0:
            best = d
    return best if best is not None else B


def bert_cnn_classifier(hidden, w1, b1, w2, b2, wc, bc, *, tb=None, cl=None):
    """hidden: (B, L, D) float32 BERT last_hidden_state (no pre-cast / pad).
    w1: (KN, 1, 1, D)  Conv2d weight, kernel_size=(1, D)
    w2: (KN, 1, 2, D)  Conv2d weight, kernel_size=(2, D)
    b1, b2: (KN,)      Conv2d biases
    wc: (NL, 2*KN), bc: (NL,)  classifier Linear
    returns softmax probabilities (B, NL)."""
    B, L, D = hidden.shape
    KN = w1.shape[0]
    NL = wc.shape[0]
    assert KN <= GP and NL <= NLP
    assert L >= 2, "kernel_size=2 conv needs at least 2 sequence positions"

    # ---- tile selection ------------------------------------------------------
    # cl: sequence positions per grid step (multiple of 8 keeps the in-kernel
    # (tb,cl,D)->(tb*cl,D) reshape layout-free).  tb: batch rows per step,
    # chosen to divide B (no whole-tensor pad) and to keep >= 4 parallel batch
    # tiles (>= 2 per v7x TensorCore) while pushing tb*cl toward ~512+ rows.
    if cl is None or L % cl != 0 or (cl % 8 != 0 and cl != L):
        cl = _pick_seq_chunk(L)
    if tb is None or B % tb != 0 or (tb % 8 != 0 and tb != B):
        tb = _pick_batch_tile(B, limit=max(8, min(1024 // max(cl, 1),
                                                  max(8, B // 4))))

    # ---- fused, pre-transposed, lane-padded conv weight (D, 3*GP) bf16 -------
    w1t = w1.reshape(KN, D).T
    w2a = w2.reshape(KN, 2, D)[:, 0, :].T
    w2b = w2.reshape(KN, 2, D)[:, 1, :].T
    padc = lambda w: jnp.pad(w, ((0, 0), (0, GP - KN)))
    wf = jnp.concatenate([padc(w1t), padc(w2a), padc(w2b)],
                         axis=1).astype(jnp.bfloat16)            # (D, 3*GP)
    # NOTE(v7x/v6e): 3*GP = 384 lanes = 1.5 MXU column passes; fine while the
    # kernel is HBM-bound, repack to a 256 multiple if it ever goes MXU-bound.

    b1p = jnp.pad(b1, (0, GP - KN)).reshape(1, GP).astype(jnp.float32)
    b2p = jnp.pad(b2, (0, GP - KN)).reshape(1, GP).astype(jnp.float32)

    # ---- split classifier weight: logits = f1 @ wc1 + f2 @ wc2 + bc ----------
    wct = wc.T.astype(jnp.float32)                               # (2*KN, NL)
    wc1 = jnp.zeros((GP, NLP), jnp.float32).at[:KN, :NL].set(wct[:KN])
    wc2 = jnp.zeros((GP, NLP), jnp.float32).at[:KN, :NL].set(wct[KN:])
    wc1 = wc1.astype(jnp.bfloat16)
    wc2 = wc2.astype(jnp.bfloat16)
    # Padded label columns get a huge negative f32 bias -> softmax ignores them.
    bcp = jnp.full((1, NLP), NEG_INF, jnp.float32).at[0, :NL].set(bc)

    # ---- VMEM budget (re-derived from the tiles, clamped to 3/4 physical) ----
    try:
        phys_vmem = int(pltpu.get_tpu_info().vmem_capacity_bytes)
    except Exception:
        phys_vmem = 64 * 1024 * 1024                 # conservative (v7x size)
    need = (2 * tb * cl * D * 4                      # double-buffered f32 hidden chunk
            + 6 * tb * cl * GP * 4                   # s (3*GP) + relu/shift temps
            + 2 * D * 3 * GP * 2                     # fused conv weight (bf16)
            + 2 * 2 * GP * NLP * 2                   # classifier weights (bf16)
            + 3 * tb * GP * 4                        # f1 / f2 / carry scratch
            + 2 * tb * NLP * 4)                      # output block
    vmem_limit = int(min(max(2 * need, 32 * 1024 * 1024), (phys_vmem * 3) // 4))

    grid = (B // tb, L // cl)
    full = lambda shape: pl.BlockSpec(shape, lambda i, j: (0,) * len(shape))

    out = pl.pallas_call(
        _bert_cnn_kernel,
        out_shape=jax.ShapeDtypeStruct((B, NLP), jnp.float32),
        grid_spec=pltpu.PrefetchScalarGridSpec(
            num_scalar_prefetch=0,
            grid=grid,
            in_specs=[
                pl.BlockSpec((tb, cl, D), lambda i, j: (i, j, 0)),  # hidden chunk
                full((D, 3 * GP)),       # fused conv weight (pre-transposed)
                full((1, GP)),           # conv k=1 bias (padded)
                full((1, GP)),           # conv k=2 bias (padded)
                full((GP, NLP)),         # classifier weight, f1 half
                full((GP, NLP)),         # classifier weight, f2 half
                full((1, NLP)),          # classifier bias (-1e30 on padded labels)
            ],
            out_specs=pl.BlockSpec((tb, NLP), lambda i, j: (i, 0)),
            scratch_shapes=[
                pltpu.VMEM((tb, GP), jnp.float32),   # running max, k=1
                pltpu.VMEM((tb, GP), jnp.float32),   # running max, k=2
                pltpu.VMEM((tb, GP), jnp.float32),   # a[] carry across seq chunks
            ],
        ),
        compiler_params=pltpu.CompilerParams(
            dimension_semantics=("parallel", "arbitrary"),
            vmem_limit_bytes=vmem_limit),
    )(hidden, wf, b1p, b2p, wc1, wc2, bcp)

    return out[:, :NL]


def _reference(hidden, w1, b1, w2, b2, wc, bc):
    """Pure-f32 JAX reference matching the PyTorch module (dropout = identity)."""
    KN = w1.shape[0]
    D = hidden.shape[-1]
    w1f = w1.reshape(KN, D)
    w2f = w2.reshape(KN, 2, D)
    s1 = jnp.einsum('bld,kd->blk', hidden, w1f) + b1
    f1 = jnp.max(jax.nn.relu(s1), axis=1)
    a = jnp.einsum('bld,kd->blk', hidden, w2f[:, 0])
    bb = jnp.einsum('bld,kd->blk', hidden, w2f[:, 1])
    s2 = a[:, :-1] + bb[:, 1:] + b2
    f2 = jnp.max(jax.nn.relu(s2), axis=1)
    feat = jnp.concatenate([f1, f2], axis=1)
    logits = feat @ wc.T + bc
    return jax.nn.softmax(logits, axis=1)


if __name__ == "__main__":
    # Small shapes consistent with the module (embed_num -> L, embed_dim -> D).
    B, L, D = 32, 16, 128
    KN, NL = 3, 2          # kernel_num, num_labels ; kernel_sizes = [1, 2]
    V = 50                 # toy vocab for the BERT stand-in

    key = jax.random.PRNGKey(0)
    k_emb, k_w1, k_b1, k_w2, k_b2, k_wc, k_bc, k_ids = jax.random.split(key, 8)

    emb_table = jax.random.normal(k_emb, (V, D), jnp.float32) * 0.1
    w1 = jax.random.normal(k_w1, (KN, 1, 1, D), jnp.float32) * 0.1
    b1 = jax.random.normal(k_b1, (KN,), jnp.float32) * 0.1
    w2 = jax.random.normal(k_w2, (KN, 1, 2, D), jnp.float32) * 0.1
    b2 = jax.random.normal(k_b2, (KN,), jnp.float32) * 0.1
    wc = jax.random.normal(k_wc, (NL, 2 * KN), jnp.float32) * 0.1
    bc = jax.random.normal(k_bc, (NL,), jnp.float32) * 0.1

    input_ids = jax.random.randint(k_ids, (B, L), 0, V)
    attention_mask = jnp.ones((B, L), jnp.float32).at[1, L - 2:].set(0.0)

    # TODO(synk): the BERT encoder (tuned_model.bert) is not reimplemented; a
    # deterministic embedding lookup (masked by attention_mask) stands in for
    # its last_hidden_state.  This glue stays in plain JAX.  (If the encoder
    # emitted bf16 the kernel would accept it directly and halve HBM traffic.)
    hidden = emb_table[input_ids] * attention_mask[..., None]    # (B, L, D) f32

    # tb=8, cl=8 -> grid (4, 2): 4 parallel batch tiles (>=2 per v7x TC) and
    # 2 sequence chunks, which exercises the cross-chunk k=2 carry path.
    probs = bert_cnn_classifier(hidden, w1, b1, w2, b2, wc, bc, tb=8, cl=8)
    jax.block_until_ready(probs)

    ref = _reference(hidden, w1, b1, w2, b2, wc, bc)

    assert probs.shape == (B, NL)
    assert bool(jnp.all(jnp.isfinite(probs)))
    assert bool(jnp.allclose(jnp.sum(probs, axis=1), 1.0, atol=1e-3))
    assert bool(jnp.allclose(probs, ref, atol=2e-2, rtol=2e-2))
    print("KERNEL_OK")
</pallas_src>

<mosaic_0001>
module attributes {stable_mosaic.version = 11 : i64} {
  func.func @_bert_cnn_kernel(%arg0: i32, %arg1: i32, %arg2: memref<8x8x128xf32, #tpu.memory_space<vmem>>, %arg3: memref<128x384xbf16, #tpu.memory_space<vmem>>, %arg4: memref<1x128xf32, #tpu.memory_space<vmem>>, %arg5: memref<1x128xf32, #tpu.memory_space<vmem>>, %arg6: memref<128x128xbf16, #tpu.memory_space<vmem>>, %arg7: memref<128x128xbf16, #tpu.memory_space<vmem>>, %arg8: memref<1x128xf32, #tpu.memory_space<vmem>>, %arg9: memref<8x128xf32, #tpu.memory_space<vmem>>, %arg10: memref<8x128xf32, #tpu.memory_space<vmem>>, %arg11: memref<8x128xf32, #tpu.memory_space<vmem>>, %arg12: memref<8x128xf32, #tpu.memory_space<vmem>>) attributes {dimension_semantics = [#tpu.dimension_semantics<parallel>, #tpu.dimension_semantics<arbitrary>], iteration_bounds = array<i64: 4, 2>, scalar_prefetch = 0 : i64, scratch_operands = 3 : i64, tpu.core_type = #tpu.core_type<tc>, window_params = [{transform_indices = @transform_0, window_bounds = array<i64: 8, 8, 128>}, {pipeline_mode = #tpu.pipeline_mode<synchronous>, transform_indices = @transform_1, window_bounds = array<i64: 128, 384>}, {pipeline_mode = #tpu.pipeline_mode<synchronous>, transform_indices = @transform_2, window_bounds = array<i64: 1, 128>}, {pipeline_mode = #tpu.pipeline_mode<synchronous>, transform_indices = @transform_3, window_bounds = array<i64: 1, 128>}, {pipeline_mode = #tpu.pipeline_mode<synchronous>, transform_indices = @transform_4, window_bounds = array<i64: 128, 128>}, {pipeline_mode = #tpu.pipeline_mode<synchronous>, transform_indices = @transform_5, window_bounds = array<i64: 128, 128>}, {pipeline_mode = #tpu.pipeline_mode<synchronous>, transform_indices = @transform_6, window_bounds = array<i64: 1, 128>}, {transform_indices = @transform_7, window_bounds = array<i64: 8, 128>}]} {
    %c0_i32 = arith.constant 0 : i32
    %0 = arith.cmpi eq, %arg1, %c0_i32 : i32
    %1 = arith.extui %0 : i1 to i32
    %c0_i32_0 = arith.constant 0 : i32
    %2 = arith.cmpi ne, %1, %c0_i32_0 : i32
    scf.if %2 {
      %cst_34 = arith.constant 0.000000e+00 : f32
      %63 = vector.broadcast %cst_34 : f32 to vector<8x128xf32>
      %c0_35 = arith.constant 0 : index
      %c0_36 = arith.constant 0 : index
      %64 = vector.load %arg10[%c0_35, %c0_36] : memref<8x128xf32, #tpu.memory_space<vmem>>, vector<8x128xf32>
      tpu.vector_store %arg10[%c0_35, %c0_36], %63 {strides = array<i32>} : memref<8x128xf32, #tpu.memory_space<vmem>>, vector<8x128xf32>,
      %cst_37 = arith.constant 0.000000e+00 : f32
      %65 = vector.broadcast %cst_37 : f32 to vector<8x128xf32>
      %c0_38 = arith.constant 0 : index
      %c0_39 = arith.constant 0 : index
      %66 = vector.load %arg11[%c0_38, %c0_39] : memref<8x128xf32, #tpu.memory_space<vmem>>, vector<8x128xf32>
      tpu.vector_store %arg11[%c0_38, %c0_39], %65 {strides = array<i32>} : memref<8x128xf32, #tpu.memory_space<vmem>>, vector<8x128xf32>,
      %cst_40 = arith.constant 0.000000e+00 : f32
      %67 = vector.broadcast %cst_40 : f32 to vector<8x128xf32>
      %c0_41 = arith.constant 0 : index
      %c0_42 = arith.constant 0 : index
      %68 = vector.load %arg12[%c0_41, %c0_42] : memref<8x128xf32, #tpu.memory_space<vmem>>, vector<8x128xf32>
      tpu.vector_store %arg12[%c0_41, %c0_42], %67 {strides = array<i32>} : memref<8x128xf32, #tpu.memory_space<vmem>>, vector<8x128xf32>,
    } else {
    }
    %c0 = arith.constant 0 : index
    %c0_1 = arith.constant 0 : index
    %c0_2 = arith.constant 0 : index
    %3 = vector.load %arg2[%c0, %c0_1, %c0_2] : memref<8x8x128xf32, #tpu.memory_space<vmem>>, vector<8x8x128xf32>
    %4 = vector.shape_cast %3 : vector<8x8x128xf32> to vector<64x128xf32>
    %5 = arith.truncf %4 : vector<64x128xf32> to vector<64x128xbf16>
    %c0_3 = arith.constant 0 : index
    %c0_4 = arith.constant 0 : index
    %6 = vector.load %arg3[%c0_3, %c0_4] : memref<128x384xbf16, #tpu.memory_space<vmem>>, vector<128x384xbf16>
    %cst = arith.constant dense<0.000000e+00> : vector<64x384xf32>
    %7 = tpu.matmul %5, %6, %cst {dimension_numbers = #tpu.dot_dimension_numbers<[1], [0], [0], [1], [0, 0, 1, 1], [], []>} : vector<64x128xbf16>, vector<128x384xbf16>, vector<64x384xf32> -> vector<64x384xf32>
    %8 = tpu.iota {dimensions = array<i32: 1>} : vector<8x8x1xi32>
    %9 = vector.extract_strided_slice %7 {offsets = [0, 0], sizes = [64, 128], strides = [1, 1]} : vector<64x384xf32> to vector<64x128xf32>
    %c0_5 = arith.constant 0 : index
    %c0_6 = arith.constant 0 : index
    %10 = vector.load %arg4[%c0_5, %c0_6] : memref<1x128xf32, #tpu.memory_space<vmem>>, vector<1x128xf32>
    %11 = vector.broadcast %10 : vector<1x128xf32> to vector<64x128xf32>
    %12 = arith.addf %9, %11 : vector<64x128xf32>
    %cst_7 = arith.constant 0.000000e+00 : f32
    %13 = vector.broadcast %cst_7 : f32 to vector<64x128xf32>
    %14 = arith.maximumf %12, %13 : vector<64x128xf32>
    %c0_8 = arith.constant 0 : index
    %c0_9 = arith.constant 0 : index
    %15 = vector.load %arg10[%c0_8, %c0_9] : memref<8x128xf32, #tpu.memory_space<vmem>>, vector<8x128xf32>
    %16 = vector.shape_cast %14 : vector<64x128xf32> to vector<8x8x128xf32>
    %cst_10 = arith.constant dense<0xFF800000> : vector<8x128xf32>
    %17 = vector.multi_reduction <maximumf>, %16, %cst_10 [1] : vector<8x8x128xf32> to vector<8x128xf32>
    %18 = arith.maximumf %15, %17 : vector<8x128xf32>
    %c0_11 = arith.constant 0 : index
    %c0_12 = arith.constant 0 : index
    %19 = vector.load %arg10[%c0_11, %c0_12] : memref<8x128xf32, #tpu.memory_space<vmem>>, vector<8x128xf32>
    tpu.vector_store %arg10[%c0_11, %c0_12], %18 {strides = array<i32>} : memref<8x128xf32, #tpu.memory_space<vmem>>, vector<8x128xf32>,
    %20 = vector.extract_strided_slice %7 {offsets = [0, 128], sizes = [64, 128], strides = [1, 1]} : vector<64x384xf32> to vector<64x128xf32>
    %21 = vector.extract_strided_slice %7 {offsets = [0, 256], sizes = [64, 128], strides = [1, 1]} : vector<64x384xf32> to vector<64x128xf32>
    %c1_i32 = arith.constant 1 : i32
    %22 = tpu.dynamic_rotate %20 by %c1_i32 dim 0 : vector<64x128xf32>, i32 -> vector<64x128xf32>
    %23 = arith.addf %22, %21 : vector<64x128xf32>
    %c0_13 = arith.constant 0 : index
    %c0_14 = arith.constant 0 : index
    %24 = vector.load %arg5[%c0_13, %c0_14] : memref<1x128xf32, #tpu.memory_space<vmem>>, vector<1x128xf32>
    %25 = vector.broadcast %24 : vector<1x128xf32> to vector<64x128xf32>
    %26 = arith.addf %23, %25 : vector<64x128xf32>
    %cst_15 = arith.constant 0.000000e+00 : f32
    %27 = vector.broadcast %cst_15 : f32 to vector<64x128xf32>
    %28 = arith.maximumf %26, %27 : vector<64x128xf32>
    %29 = vector.shape_cast %28 : vector<64x128xf32> to vector<8x8x128xf32>
    %c1_i32_16 = arith.constant 1 : i32
    %30 = vector.broadcast %c1_i32_16 : i32 to vector<8x8x1xi32>
    %31 = arith.cmpi sge, %8, %30 : vector<8x8x1xi32>
    %cst_17 = arith.constant 0.000000e+00 : f32
    %32 = vector.shape_cast %31 : vector<8x8x1xi1> to vector<8x8x1xi1>
    %33 = vector.broadcast %32 : vector<8x8x1xi1> to vector<8x8x128xi1>
    %34 = vector.broadcast %cst_17 : f32 to vector<8x8x128xf32>
    %35 = arith.select %33, %29, %34 : vector<8x8x128xi1>, vector<8x8x128xf32>
    %c0_18 = arith.constant 0 : index
    %c0_19 = arith.constant 0 : index
    %36 = vector.load %arg11[%c0_18, %c0_19] : memref<8x128xf32, #tpu.memory_space<vmem>>, vector<8x128xf32>
    %cst_20 = arith.constant dense<0xFF800000> : vector<8x128xf32>
    %37 = vector.multi_reduction <maximumf>, %35, %cst_20 [1] : vector<8x8x128xf32> to vector<8x128xf32>
    %38 = arith.maximumf %36, %37 : vector<8x128xf32>
    %c0_21 = arith.constant 0 : index
    %c0_22 = arith.constant 0 : index
    %39 = vector.load %arg11[%c0_21, %c0_22] : memref<8x128xf32, #tpu.memory_space<vmem>>, vector<8x128xf32>
    tpu.vector_store %arg11[%c0_21, %c0_22], %38 {strides = array<i32>} : memref<8x128xf32, #tpu.memory_space<vmem>>, vector<8x128xf32>,
    %40 = vector.shape_cast %20 : vector<64x128xf32> to vector<8x8x128xf32>
    %41 = vector.shape_cast %21 : vector<64x128xf32> to vector<8x8x128xf32>
    %c7_i32 = arith.constant 7 : i32
    %42 = vector.broadcast %c7_i32 : i32 to vector<8x8x1xi32>
    %43 = arith.cmpi eq, %8, %42 : vector<8x8x1xi32>
    %cst_23 = arith.constant 0xFF800000 : f32
    %44 = vector.shape_cast %43 : vector<8x8x1xi1> to vector<8x8x1xi1>
    %45 = vector.broadcast %44 : vector<8x8x1xi1> to vector<8x8x128xi1>
    %46 = vector.broadcast %cst_23 : f32 to vector<8x8x128xf32>
    %47 = arith.select %45, %40, %46 : vector<8x8x128xi1>, vector<8x8x128xf32>
    %cst_24 = arith.constant dense<0xFF800000> : vector<8x128xf32>
    %48 = vector.multi_reduction <maximumf>, %47, %cst_24 [1] : vector<8x8x128xf32> to vector<8x128xf32>
    %c0_i32_25 = arith.constant 0 : i32
    %49 = vector.broadcast %c0_i32_25 : i32 to vector<8x8x1xi32>
    %50 = arith.cmpi eq, %8, %49 : vector<8x8x1xi32>
    %cst_26 = arith.constant 0xFF800000 : f32
    %51 = vector.shape_cast %50 : vector<8x8x1xi1> to vector<8x8x1xi1>
    %52 = vector.broadcast %51 : vector<8x8x1xi1> to vector<8x8x128xi1>
    %53 = vector.broadcast %cst_26 : f32 to vector<8x8x128xf32>
    %54 = arith.select %52, %41, %53 : vector<8x8x128xi1>, vector<8x8x128xf32>
    %cst_27 = arith.constant dense<0xFF800000> : vector<8x128xf32>
    %55 = vector.multi_reduction <maximumf>, %54, %cst_27 [1] : vector<8x8x128xf32> to vector<8x128xf32>
    %c1_i32_28 = arith.constant 1 : i32
    %56 = arith.cmpi sge, %arg1, %c1_i32_28 : i32
    %57 = arith.extui %56 : i1 to i32
    %c0_i32_29 = arith.constant 0 : i32
    %58 = arith.cmpi ne, %57, %c0_i32_29 : i32
    scf.if %58 {
      %c0_34 = arith.constant 0 : index
      %c0_35 = arith.constant 0 : index
      %63 = vector.load %arg12[%c0_34, %c0_35] : memref<8x128xf32, #tpu.memory_space<vmem>>, vector<8x128xf32>
      %64 = arith.addf %63, %55 : vector<8x128xf32>
      %c0_36 = arith.constant 0 : index
      %c0_37 = arith.constant 0 : index
      %65 = vector.load %arg5[%c0_36, %c0_37] : memref<1x128xf32, #tpu.memory_space<vmem>>, vector<1x128xf32>
      %66 = vector.broadcast %65 : vector<1x128xf32> to vector<8x128xf32>
      %67 = arith.addf %64, %66 : vector<8x128xf32>
      %cst_38 = arith.constant 0.000000e+00 : f32
      %68 = vector.broadcast %cst_38 : f32 to vector<8x128xf32>
      %69 = arith.maximumf %67, %68 : vector<8x128xf32>
      %c0_39 = arith.constant 0 : index
      %c0_40 = arith.constant 0 : index
      %70 = vector.load %arg11[%c0_39, %c0_40] : memref<8x128xf32, #tpu.memory_space<vmem>>, vector<8x128xf32>
      %71 = arith.maximumf %70, %69 : vector<8x128xf32>
      %c0_41 = arith.constant 0 : index
      %c0_42 = arith.constant 0 : index
      %72 = vector.load %arg11[%c0_41, %c0_42] : memref<8x128xf32, #tpu.memory_space<vmem>>, vector<8x128xf32>
      tpu.vector_store %arg11[%c0_41, %c0_42], %71 {strides = array<i32>} : memref<8x128xf32, #tpu.memory_space<vmem>>, vector<8x128xf32>,
    } else {
    }
    %c0_30 = arith.constant 0 : index
    %c0_31 = arith.constant 0 : index
    %59 = vector.load %arg12[%c0_30, %c0_31] : memref<8x128xf32, #tpu.memory_space<vmem>>, vector<8x128xf32>
    tpu.vector_store %arg12[%c0_30, %c0_31], %48 {strides = array<i32>} : memref<8x128xf32, #tpu.memory_space<vmem>>, vector<8x128xf32>,
    %c1_i32_32 = arith.constant 1 : i32
    %60 = arith.cmpi eq, %arg1, %c1_i32_32 : i32
    %61 = arith.extui %60 : i1 to i32
    %c0_i32_33 = arith.constant 0 : i32
    %62 = arith.cmpi ne, %61, %c0_i32_33 : i32
    scf.if %62 {
      %c0_34 = arith.constant 0 : index
      %c0_35 = arith.constant 0 : index
      %63 = vector.load %arg10[%c0_34, %c0_35] : memref<8x128xf32, #tpu.memory_space<vmem>>, vector<8x128xf32>
      %64 = arith.truncf %63 : vector<8x128xf32> to vector<8x128xbf16>
      %c0_36 = arith.constant 0 : index
      %c0_37 = arith.constant 0 : index
      %65 = vector.load %arg6[%c0_36, %c0_37] : memref<128x128xbf16, #tpu.memory_space<vmem>>, vector<128x128xbf16>
      %cst_38 = arith.constant dense<0.000000e+00> : vector<8x128xf32>
      %66 = tpu.matmul %64, %65, %cst_38 {dimension_numbers = #tpu.dot_dimension_numbers<[1], [0], [0], [1], [0, 0, 1, 1], [], []>} : vector<8x128xbf16>, vector<128x128xbf16>, vector<8x128xf32> -> vector<8x128xf32>
      %c0_39 = arith.constant 0 : index
      %c0_40 = arith.constant 0 : index
      %67 = vector.load %arg11[%c0_39, %c0_40] : memref<8x128xf32, #tpu.memory_space<vmem>>, vector<8x128xf32>
      %68 = arith.truncf %67 : vector<8x128xf32> to vector<8x128xbf16>
      %c0_41 = arith.constant 0 : index
      %c0_42 = arith.constant 0 : index
      %69 = vector.load %arg7[%c0_41, %c0_42] : memref<128x128xbf16, #tpu.memory_space<vmem>>, vector<128x128xbf16>
      %cst_43 = arith.constant dense<0.000000e+00> : vector<8x128xf32>
      %70 = tpu.matmul %68, %69, %cst_43 {dimension_numbers = #tpu.dot_dimension_numbers<[1], [0], [0], [1], [0, 0, 1, 1], [], []>} : vector<8x128xbf16>, vector<128x128xbf16>, vector<8x128xf32> -> vector<8x128xf32>
      %71 = arith.addf %66, %70 : vector<8x128xf32>
      %c0_44 = arith.constant 0 : index
      %c0_45 = arith.constant 0 : index
      %72 = vector.load %arg8[%c0_44, %c0_45] : memref<1x128xf32, #tpu.memory_space<vmem>>, vector<1x128xf32>
      %73 = vector.broadcast %72 : vector<1x128xf32> to vector<8x128xf32>
      %74 = arith.addf %71, %73 : vector<8x128xf32>
      %cst_46 = arith.constant dense<0xFF800000> : vector<8xf32>
      %75 = vector.multi_reduction <maximumf>, %74, %cst_46 [1] : vector<8x128xf32> to vector<8xf32>
      %76 = vector.shape_cast %75 : vector<8xf32> to vector<8x1xf32>
      %77 = vector.broadcast %76 : vector<8x1xf32> to vector<8x128xf32>
      %78 = arith.subf %74, %77 : vector<8x128xf32>
      %79 = math.exp %78 : vector<8x128xf32>
      %cst_47 = arith.constant dense<0.000000e+00> : vector<8xf32>
      %80 = vector.multi_reduction <add>, %79, %cst_47 [1] : vector<8x128xf32> to vector<8xf32>
      %81 = vector.shape_cast %80 : vector<8xf32> to vector<8x1xf32>
      %82 = vector.broadcast %81 : vector<8x1xf32> to vector<8x128xf32>
      %83 = arith.divf %79, %82 : vector<8x128xf32>
      %c0_48 = arith.constant 0 : index
      %c0_49 = arith.constant 0 : index
      %84 = vector.load %arg9[%c0_48, %c0_49] : memref<8x128xf32, #tpu.memory_space<vmem>>, vector<8x128xf32>
      tpu.vector_store %arg9[%c0_48, %c0_49], %83 {strides = array<i32>} : memref<8x128xf32, #tpu.memory_space<vmem>>, vector<8x128xf32>,
    } else {
    }
    return
  }
  func.func @transform_0(%arg0: i32, %arg1: i32) -> (i32, i32, i32) {
    %c0_i32 = arith.constant 0 : i32
    %c0_i32_0 = arith.constant 0 : i32
    return %arg0, %arg1, %c0_i32 : i32, i32, i32
  }
  func.func @transform_1(%arg0: i32, %arg1: i32) -> (i32, i32) {
    %c0_i32 = arith.constant 0 : i32
    %c0_i32_0 = arith.constant 0 : i32
    %c0_i32_1 = arith.constant 0 : i32
    return %c0_i32, %c0_i32_0 : i32, i32
  }
  func.func @transform_2(%arg0: i32, %arg1: i32) -> (i32, i32) {
    %c0_i32 = arith.constant 0 : i32
    %c0_i32_0 = arith.constant 0 : i32
    %c0_i32_1 = arith.constant 0 : i32
    return %c0_i32, %c0_i32_0 : i32, i32
  }
  func.func @transform_3(%arg0: i32, %arg1: i32) -> (i32, i32) {
    %c0_i32 = arith.constant 0 : i32
    %c0_i32_0 = arith.constant 0 : i32
    %c0_i32_1 = arith.constant 0 : i32
    return %c0_i32, %c0_i32_0 : i32, i32
  }
  func.func @transform_4(%arg0: i32, %arg1: i32) -> (i32, i32) {
    %c0_i32 = arith.constant 0 : i32
    %c0_i32_0 = arith.constant 0 : i32
    %c0_i32_1 = arith.constant 0 : i32
    return %c0_i32, %c0_i32_0 : i32, i32
  }
  func.func @transform_5(%arg0: i32, %arg1: i32) -> (i32, i32) {
    %c0_i32 = arith.constant 0 : i32
    %c0_i32_0 = arith.constant 0 : i32
    %c0_i32_1 = arith.constant 0 : i32
    return %c0_i32, %c0_i32_0 : i32, i32
  }
  func.func @transform_6(%arg0: i32, %arg1: i32) -> (i32, i32) {
    %c0_i32 = arith.constant 0 : i32
    %c0_i32_0 = arith.constant 0 : i32
    %c0_i32_1 = arith.constant 0 : i32
    return %c0_i32, %c0_i32_0 : i32, i32
  }
  func.func @transform_7(%arg0: i32, %arg1: i32) -> (i32, i32) {
    %c0_i32 = arith.constant 0 : i32
    %c0_i32_0 = arith.constant 0 : i32
    return %arg0, %c0_i32 : i32, i32
  }
}

</mosaic_0001>

<bundles_post_ra>
// kernel: tpu_custom_call.1
= control target key start
LH: loop header
LB: loop body
LE: loop exit
PB: predicated region body
PF: predicated region fallthrough
CT: control target
= control target key end

     0   :  { %s2590_s0 = inlined_call_operand.hbm [shape: f32[32,16,128], index: 0, kind: input, shape index: {}]   ;;  %s2591_s1 = inlined_call_operand.hbm [shape: bf16[128,384], index: 1, kind: input, shape index: {}]   ;;  %s2592_s2 = inlined_call_operand.vmem [shape: f32[1,128], index: 2, kind: input, shape index: {}]   ;;  %s2593_s3 = inlined_call_operand.vmem [shape: f32[1,128], index: 3, kind: input, shape index: {}]   ;;  %s2594_s4 = inlined_call_operand.hbm [shape: bf16[128,128], index: 4, kind: input, shape index: {}]   ;;  %s2595_s5 = inlined_call_operand.hbm [shape: bf16[128,128], index: 5, kind: input, shape index: {}]   ;;  %s2596_s6 = inlined_call_operand.vmem [shape: f32[1,128], index: 6, kind: input, shape index: {}]   ;;  %s2597_s7 = inlined_call_operand.hbm [shape: f32[32,128], index: 7, kind: output, shape index: {}]  }
   0x1   :  { %2612 = sst [smem:[#allocation25_spill]] %s2591_s1 }
   0x2   :  { %2613 = sst [smem:[#allocation26_spill]] %s2594_s4 }
   0x3   :  { %2614 = sst [smem:[#allocation27_spill]] %s2595_s5 }
   0x4   :  { %2615 = sst [smem:[#allocation28_spill]] %s2597_s7 }
   0x5   :  { %12 = vsyncpa [#allocation6], 0 }
   0x6   :  { %14 = vsyncpa [#allocation6 + $0x1], 0 }
   0x7   :  { %15 = vsyncpa [#allocation9], 0 }
   0x8   :  { %16 = vsyncpa [#allocation12], 0 }
   0x9   :  { %17 = vsyncpa [#allocation7], 0 }
   0xa   :  { %19 = vsyncpa [#allocation7 + $0x1], 0  ;;  %s2081_s24 = smov 0   ;;  %s2083_s25 = smov 0  }
   0xb   :  { %s2085_s26 = smov 0   ;;  %s2087_s27 = smov 0  }
   0xc   :  { %s2089_s28 = smov 0   ;;  %s2091_s29 = smov 0  }
   0xd   :  { %s2093_s30 = smov 0   ;;  %s2095_s8 = smov 0  }
   0xe   :  { %s2097_s9 = smov 0   ;;  %s2099_s10 = smov 0  }
   0xf   :  { %s2101_s11 = smov 0  }
  0x10 LB: > { %2616 = sst [smem:[#allocation18_spill]] %s1983_s24  ;;  %s1430_s12 = sadd.s32 4294967295, %s2023_s11   ;;  %s2023_s11 = sphi %s2101_s11, %s25_s11   ;;  %s2019_s10 = sphi %s2099_s10, %s2655_s10   ;;  %s2015_s9 = sphi %s2097_s9, %s2646_s9   ;;  %s2011_s8 = sphi %s2095_s8, %s2654_s8   ;;  %s2007_s30 = sphi %s2093_s30, %s2645_s30   ;;  %s2003_s29 = sphi %s2091_s29, %s2653_s29   ;;  %s1999_s28 = sphi %s2089_s28, %s2652_s28   ;;  %s1995_s27 = sphi %s2087_s27, %s2651_s27   ;;  %s1991_s26 = sphi %s2085_s26, %s2650_s26   ;;  %s1987_s25 = sphi %s2083_s25, %s2649_s25   ;;  %s1983_s24 = sphi %s2081_s24, %s2648_s24  }
  0x11   : > { %2617 = sst [smem:[#allocation19_spill]] %s2015_s9  ;;  %s1431_s13 = sadd.s32 4294967294, %s2023_s11  }
  0x12   : > { %2618 = sst [smem:[#allocation20_spill]] %s2023_s11  ;;  %p53_p0 = scmp.ne.s32.totalorder %s2003_s29, %s1999_s28 }
  0x13   : > { %p54_p1 = scmp.eq.s32.totalorder %s2023_s11, 0  ;;  %p59_p2 = scmp.ne.s32.totalorder %s1999_s28, %s1995_s27 }
  0x14   : > { %p2141_p3 = scmp.eq.s32.totalorder %s1430_s12, 0  ;;  %p208_p5 = scmp.ne.s32.totalorder %s1991_s26, %s1987_s25 }
  0x15   : > { %p2146_p4 = por %p54_p1, %p53_p0  ;;  %p209_p7 = scmp.eq.s32.totalorder %s1430_s12, 7 }
  0x16   : > { %s2619_s15 = scalar_select %p2141_p3, 1, 0 }
  0x17   : > { %p2154_p6 = por %p2141_p3, %p59_p2  ;;  %p214_p8 = scmp.ne.s32.totalorder %s1987_s25, %s1983_s24 }
  0x18   : > { %p215_p9 = scmp.eq.s32.totalorder %s1431_s13, 7  ;;  %p2160_p10 = por %p209_p7, %p208_p5 }
  0x19   : > { %s2621_s18 = scalar_select %p2154_p6, 1, 0 }
  0x1a   : > { %s2622_s19 = scalar_select %p2160_p10, 1, 0 }
  0x1b   : > { %p1432_p11 = scmp.ge.s32.totalorder %s2023_s11, 1  ;;  %p2165_p12 = por %p215_p9, %p214_p8 }
  0x1c   : > { %2623 = sst [smem:[#allocation21_spill]] %s2622_s19  ;;  %p222_p13 = scmp.lt.s32.totalorder %s2023_s11, 9 }
  0x1d   : > { %s2624_s20 = scalar_select %p2165_p12, 1, 0 }
  0x1e   : > { %p2170_p0 = pnand %p1432_p11, %p222_p13  ;;  %s2025_s22 = smov [#allocation8]  }
  0x1f   : > { %2625 = sst [smem:[#allocation22_spill]] %s2624_s20  ;;  %s234_s23 = sshll.u32 %s2025_s22, 4  ;;  %s235_s23 = int_to_ptr.vmem [resolvable:$true] %s234_s23 }
  0x20   : > { %p1609_p1 = pneg %p2170_p0  ;;  %p1630_p2 = scmp.lt.s32.totalorder %s2023_s11, 8 }
  0x21   : > { %s2026_s13 = smov [#allocation10]   ;;  %s1800_s22 = scalar_lea.vmem %s235_s23, 3072 }
  0x22   : > { %p2179_p5 = pnand %p1609_p1, %p2141_p3  ;;  %p2185_p7 = pnand %p1630_p2, %p2146_p4 }
  0x23   : > { %s253_s14 = sshll.u32 %s2026_s13, 4  ;;  %p1801_p9 = scmp.ne.s32.totalorder %s235_s23, %s1800_s22  ;;  %s254_s14 = int_to_ptr.vmem [resolvable:$true] %s253_s14 }
  0x24   : > { %p1791_p8 = pneg %p2179_p5  ;;  %p1808_p1 = scmp.lt.s32.totalorder %s235_s23, %s235_s23 }
  0x25   : > { %p1809_p12 = scmp.lt.s32.totalorder %s1800_s22, %s1800_s22 }
  0x26   : > { %p1803_p11 = pnand %p1801_p9, %p1791_p8 }
  0x27   : > { %p1810_p10 = por %p1809_p12, %p1808_p1 }
  0x28   : > { %p1804_p13 = pneg %p1803_p11 }
  0x2a   : > { %p1811_p3 = pnand %p1810_p10, %p1804_p13 }
  0x2c   : > { %1814 = shalt.err (!%p1811_p3)
}
  0x2d   : > { %s2027_s17 = smov 192   ;;  %s2028_s16 = smov 12  }
  0x2e   : > { %s2629_s1 = sld [smem:[#allocation25_spill]]  ;;  %s1826_s24 = scalar_lea.vmem %s254_s14, 1024 }
  0x2f   : > { %p1827_p4 = scmp.ne.s32.totalorder %s254_s14, %s1826_s24  ;;  %p1834_p11 = scmp.lt.s32.totalorder %s254_s14, %s254_s14 }
  0x30   : > { %p1835_p6 = scmp.lt.s32.totalorder %s1826_s24, %s1826_s24 }
  0x31   : > { %p1829_p2 = pnand %p1827_p4, %p1791_p8 }
  0x32   : > { %p1836_p12 = por %p1835_p6, %p1834_p11 }
  0x33   : > { %p1830_p9 = pneg %p1829_p2 }
  0x34   : > { %1612 = dma.hbm_to_vmem [thread:$0]  (!%p2179_p5), %s2629_s1, 3072, %s235_s23, [#allocation9], %s2027_s17, %s2027_s17, %s2028_s16  }
  0x35   : > { %p1837_p10 = pnand %p1836_p12, %p1830_p9 }
  0x37   : > { %1840 = shalt.err (!%p1837_p10)
}
  0x38   : > { %s2029_s22 = smov 64   ;;  %s2030_s11 = smov 4  }
  0x39   : > { %s2630_s4 = sld [smem:[#allocation26_spill]]  ;;  %s2031_s16 = smov [#allocation11]  }
  0x3a   : > { %s266_s20 = sshll.u32 %s2031_s16, 4  ;;  %s267_s20 = int_to_ptr.vmem [resolvable:$true] %s266_s20 }
  0x3b   : > { %s1852_s23 = scalar_lea.vmem %s267_s20, 1024  ;;  %p1860_p1 = scmp.lt.s32.totalorder %s267_s20, %s267_s20 }
  0x3c   : > { %p1853_p3 = scmp.ne.s32.totalorder %s267_s20, %s1852_s23  ;;  %p1861_p4 = scmp.lt.s32.totalorder %s1852_s23, %s1852_s23 }
  0x3e   : > { %p1855_p13 = pnand %p1853_p3, %p1791_p8  ;;  %p1862_p2 = por %p1861_p4, %p1860_p1 }
  0x3f   : > { %1615 = dma.hbm_to_vmem [thread:$0]  (!%p2179_p5), %s2630_s4, 1024, %s254_s14, [#allocation9], %s2029_s22, %s2029_s22, %s2030_s11  }
  0x40   : > { %p1856_p6 = pneg %p1855_p13 }
  0x42   : > { %p1863_p9 = pnand %p1862_p2, %p1856_p6 }
  0x44   : > { %1866 = shalt.err (!%p1863_p9)
}
  0x45   : > { %s2631_s5 = sld [smem:[#allocation27_spill]]  ;;  %s34_s7 = sadd.s32 1, %s2015_s9 }
  0x46   : > { %s37_s14 = sadd.s32 1, %s2019_s10  ;;  %p35_p8 = scmp.ge.s32.totalorder %s34_s7, 2 }
  0x47   : > { %s283_s19 = sand.u32 1, %s2003_s29   ;;  %s1498_s16 = sshll.u32 %s2019_s10, 4 }
  0x48   : > { %s1437_s13 = sshll.u32 %s283_s19, 6  ;;  %s2657_s7 = smov (%p35_p8, %s34_s7), 0 }
  0x49   : > { %2632 = sst [smem:[#allocation23_spill]] %s2657_s7  ;;  %s2659_s14 = smov (!%p35_p8, %s37_s14), %s2019_s10 }
  0x4a   : > { %s42_s27 = ssub.s32 %s2015_s9, %s2657_s7  ;;  %p39_p11 = scmp.ge.s32.totalorder %s2659_s14, 4 }
  0x4b   : > { %1618 = dma.hbm_to_vmem [thread:$0]  (!%p2179_p5), %s2631_s5, 1024, %s267_s20, [#allocation12], %s2029_s22, %s2029_s22, %s2030_s11  }
  0x4c   : > { %s293_s23 = sadd.s32 %s2015_s9, %s1498_s16  ;;  %s287_s11 = scalar_lea.vmem [#allocation5], %s1437_s13 }
  0x4d   : > { %s296_s22 = sshll.u32 %s287_s11, 4  ;;  %s2661_s14 = smov (%p39_p11, %s2659_s14), 0  ;;  %s2227_s22 = int_to_ptr.vmem [resolvable:$true] %s296_s22 }
  0x4e   : > { %2633 = sst [smem:[#allocation24_spill]] %s2661_s14  ;;  %s1440_s20 = sshll.u32 %s293_s23, 7 }
  0x4f   : > { %s41_s24 = ssub.s32 %s2019_s10, %s2661_s14  ;;  %s295_s4 = scalar_lea.hbm %s2590_s0, %s1440_s20 }
  0x50   : > { %s43_s5 = sor.u32 %s42_s27, %s41_s24  ;;  %p196_p5 = scmp.eq.s32.totalorder %s41_s24, 0 }
  0x51   : > { %p44_p12 = scmp.eq.s32.totalorder %s43_s5, 0  ;;  %s2634_s16 = sadd.s32 1, %s1991_s26 }
  0x52   : > { %s2237_s13 = scalar_select %p196_p5, %s1991_s26, %s2634_s16  }
  0x53   : > { %s2635_s11 = sadd.s32 1, %s2003_s29  ;;  %s284_s23 = scalar_lea.sflag [#allocation6], %s283_s19 }
  0x54   : > { %s2242_s7 = scalar_select %p44_p12, %s2003_s29, %s2635_s11  }
  0x55   : > { %p1869_p10 = pneg %p2185_p7  ;;  %s1880_s9 = scalar_lea.vmem %s2227_s22, 1024 }
  0x56   : > { %p1881_p3 = scmp.ne.s32.totalorder %s2227_s22, %s1880_s9  ;;  %s2032_s14 = smov [#allocation5]  }
  0x57   : > { %s1885_s1 = sshll.u32 %s2032_s14, 4  ;;  %s1886_s1 = int_to_ptr.vmem [resolvable:$false] %s1885_s1 }
  0x58   : > { %p1883_p13 = pnand %p1881_p3, %p1869_p10  ;;  %s1887_s20 = scalar_lea.vmem %s1886_s1, 2048 }
  0x59   : > { %p1888_p1 = scmp.lt.s32.totalorder %s2227_s22, %s1886_s1  ;;  %p1889_p4 = scmp.lt.s32.totalorder %s1887_s20, %s1880_s9 }
  0x5a   : > { %p1884_p6 = pneg %p1883_p13 }
  0x5b   : > { %p1890_p2 = por %p1889_p4, %p1888_p1 }
  0x5d   : > { %p1891_p9 = pnand %p1890_p2, %p1884_p6 }
  0x5f   : > { %1894 = shalt.err (!%p1891_p9)
}
  0x60   : > { %s2033_s5 = smov 256   ;;  %s2034_s27 = smov 128  }
  0x61   : > { %s2035_s19 = smov 8   ;;  %308 = sbr.rel (%p2170_p0) target bundleno = 1020 (0x3fc), region = 48 }
  0x62   : > { %1622 = dma.hbm_to_vmem [thread:$0]  (!%p2185_p7), %s295_s4, 1024, %s2227_s22, %s284_s23, %s2033_s5, %s2034_s27, %s2035_s19  }
  0x63   : > { %s310_s14 = sand.u32 (!%p2170_p0), 1, %s1999_s28   ;;  %p2636_p8 = scmp.ne.s32.totalorder (!%p2170_p0), %s2621_s18, 0 }
  0x64   : > { %s1442_s24 = sshll.u32 (!%p2170_p0), %s310_s14, 6  ;;  %s311_s17 = scalar_lea.sflag (!%p2170_p0), [#allocation6], %s310_s14 }
  0x65   : > { %s2255_s16 = scalar_lea.vmem (!%p2170_p0), [#allocation5], %s1442_s24 }
  0x66   : > { %1966 = dma.done.wait (%p2636_p8), %s311_s17, 1024  }
  0x67   : > { %1968 = vsyncadd (%p2636_p8), %s311_s17, 4294966272  ;;  %p2637_p11 = scmp.ne.s32.totalorder %s2619_s15, 0 }
  0x69   : > { %1970 = dma.done.wait (%p2637_p11), [#allocation9], 4096  }
  0x6a   : > { %1972 = vsyncadd (%p2637_p11), [#allocation9], 4294963200 }
  0x6b   : > { %1974 = dma.done.wait (%p2637_p11), [#allocation12], 1024  }
  0x6c   : > { %1976 = vsyncadd (%p2637_p11), [#allocation12], 4294966272  ;;  %s354_s4 = sand.u32 1, %s1987_s25   ;;  %p1447_p0 = scmp.ne.s32.totalorder %s2007_s30, 0 }
  0x6d   : > { %s2272_s9 = sshll.u32 %s354_s4, 3 }
  0x6e   : > { %s356_s18 = scalar_lea.vmem [#allocation13], %s2272_s9  ;;  %362 = sbr.rel (%p1447_p0) target bundleno = 118 (0x76), region = 68 }
  0x73   : > { %v2036_v0 = vmov 0.0  }
  0x74   : > { %363 = vst [vmem:[#allocation2] sm:$0xff] %v2036_v0  ;;  %364 = vst [vmem:[#allocation3] sm:$0xff] %v2036_v0 }
  0x75   : > { %365 = vst [vmem:[#allocation4] sm:$0xff] %v2036_v0 }
  0x76 PF: > { %v1737_v1 = vld [vmem:[#allocation8 + $0xac] ss:$12 sps:$4 sm:$0xff]   ;;  %v1739_v2 = vld [vmem:[#allocation8 + $0xa8] ss:$12 sps:$4 sm:$0xff]   ;;  %v2037_v3 = vmov 0   ;;  %v366_v19 = vld [vmem:[%s2255_s16] sm:$0xff]  ;;  %v676_v38 = vlaneseq }
  0x77   : > { %570 = vmatprep.mubr.bf16.mxu0 %v2037_v3  ;;  %538 = vmatprep.subr.bf16.mxu0 %v1737_v1  ;;  %v1740_v4 = vld [vmem:[#allocation8 + $0xb0] ss:$12 sps:$4 sm:$0xff]   ;;  %v1741_v5 = vld [vmem:[#allocation8 + $0x94] ss:$12 sps:$4 sm:$0xff]   ;;  %v1744_v7 = vld [vmem:[#allocation8 + $0x98] ss:$12 sps:$4 sm:$0xff]  }
  0x78   : > { %539 = vmatpush1.bf16.msra.mxu0 %v1739_v2  ;;  %v1743_v6 = vld [vmem:[#allocation8 + $0x90] ss:$12 sps:$4 sm:$0xff]   ;;  %1529 = vmatprep.subr.bf16.mxu1 %v1740_v4  ;;  %v1748_v9 = vld [vmem:[#allocation8 + $0x80] ss:$12 sps:$4 sm:$0xff]   ;;  %v1747_v10 = vld [vmem:[#allocation8 + $0x78] ss:$12 sps:$4 sm:$0xff]  }
  0x79   : > { %540 = vmatprep.subr.bf16.mxu0 %v1741_v5  ;;  %1530 = vmatpush3.bf16.msra.mxu1 %v1740_v4  ;;  %v1745_v8 = vld [vmem:[#allocation8 + $0x7c] ss:$12 sps:$4 sm:$0xff]   ;;  %v1749_v11 = vld [vmem:[#allocation8 + $0x64] ss:$12 sps:$4 sm:$0xff]   ;;  %v1751_v13 = vld [vmem:[#allocation8 + $0x60] ss:$12 sps:$4 sm:$0xff]  }
  0x7a   : > { %1531 = vmatprep.subr.bf16.mxu1 %v1744_v7  ;;  %v1752_v12 = vld [vmem:[#allocation8 + $0x68] ss:$12 sps:$4 sm:$0xff]   ;;  %v1753_v14 = vld [vmem:[#allocation8 + $0x4c] ss:$12 sps:$4 sm:$0xff]   ;;  %v1756_v15 = vld [vmem:[#allocation8 + $0x50] ss:$12 sps:$4 sm:$0xff]  }
  0x7b   : > { %v1755_v16 = vld [vmem:[#allocation8 + $0x48] ss:$12 sps:$4 sm:$0xff]   ;;  %v1760_v18 = vld [vmem:[#allocation8 + $0x38] ss:$12 sps:$4 sm:$0xff]   ;;  %v1759_v20 = vld [vmem:[#allocation8 + $0x30] ss:$12 sps:$4 sm:$0xff]  }
  0x7c   : > { %541 = vmatpush1.bf16.msra.mxu0 %v1743_v6  ;;  %v1757_v17 = vld [vmem:[#allocation8 + $0x34] ss:$12 sps:$4 sm:$0xff]   ;;  %v367_v21 = vld [vmem:[%s2255_s16 + $0x8] sm:$0xff]  ;;  %v1763_v25 = vld [vmem:[#allocation8 + $0x18] ss:$12 sps:$4 sm:$0xff]   ;;  %v2288_v39 = vshrl.u32 %v676_v38, 7 }
  0x7d   : > { %542 = vmatprep.subr.bf16.mxu0 %v1745_v8  ;;  %1532 = vmatpush3.bf16.msra.mxu1 %v1744_v7  ;;  %v1761_v22 = vld [vmem:[#allocation8 + $0x1c] ss:$12 sps:$4 sm:$0xff]   ;;  %v374_v23 = vpack.c.bf16 %v367_v21, %v366_v19  ;;  %v1764_v24 = vld [vmem:[#allocation8 + $0x20] ss:$12 sps:$4 sm:$0xff]   ;;  %v1765_v26 = vld [vmem:[#allocation8 + $0x4] ss:$12 sps:$4 sm:$0xff]  }
  0x7e   : > { %1533 = vmatprep.subr.bf16.mxu1 %v1748_v9  ;;  %v1768_v27 = vld [vmem:[#allocation8 + $0x8] ss:$12 sps:$4 sm:$0xff]   ;;  %v1767_v28 = vld [vmem:[#allocation8] ss:$12 sps:$4 sm:$0xff]   ;;  %v369_v30 = vld [vmem:[%s2255_s16 + $0x18] sm:$0xff]  ;;  %vm901_vm0 = vcmp.eq.s32.totalorder %v2288_v39, 7 }
  0x7f   : > { %1545 = vmatprep.mubr.bf16.mxu1 %v374_v23  ;;  %v368_v29 = vld [vmem:[%s2255_s16 + $0x10] sm:$0xff]  ;;  %v370_v32 = vld [vmem:[%s2255_s16 + $0x20] sm:$0xff]  ;;  %v371_v33 = vld [vmem:[%s2255_s16 + $0x28] sm:$0xff]  ;;  %vm960_vm1 = vcmp.eq.s32.totalorder %v2288_v39, 0  ;;  %vm783_vm2 = vcmp.lt.s32.totalorder %v2288_v39, 1  ;;  %vm823_vm3 = vcmp.ge.s32.totalorder %v2288_v39, 1 }
  0x80   : > { %543 = vmatpush1.bf16.msra.mxu0 %v1747_v10  ;;  %v375_v31 = vpack.c.bf16 %v369_v30, %v368_v29  ;;  %v376_v34 = vpack.c.bf16 %v371_v33, %v370_v32  ;;  %v372_v35 = vld [vmem:[%s2255_s16 + $0x30] sm:$0xff]  ;;  %v373_v36 = vld [vmem:[%s2255_s16 + $0x38] sm:$0xff]  ;;  %v2310_v50 = vld [vmem:[%s2592_s2] ss:$0 sm:$0xff]  ;;  %vm758_vm4 = vcmask 1041409   ;;  %vm760_vm5 = vcmask 1042434  }
  0x81   : > { %544 = vmatprep.subr.bf16.mxu0 %v1749_v11  ;;  %1534 = vmatpush3.bf16.msra.mxu1 %v1748_v9  ;;  %v377_v37 = vpack.c.bf16 %v373_v36, %v372_v35  ;;  %v2339_v29 = vld [vmem:[%s2593_s3] ss:$0 sm:$0xff]  ;;  %vm762_vm6 = vcmask 1043459   ;;  %vm764_vm7 = vcmask 1044484   ;;  %vm766_vm8 = vcmask 1045509   ;;  %p1474_p7 = scmp.lt.s32.totalorder %s2007_s30, 1 }
  0x82   : > { %1535 = vmatprep.subr.bf16.mxu1 %v1752_v12  ;;  %vm768_vm9 = vcmask 1046534   ;;  %vm770_vm10 = vcmask 1047559  }
  0x84   : > { %545 = vmatpush1.bf16.msra.mxu0 %v1751_v13 }
  0x85   : > { %546 = vmatprep.subr.bf16.mxu0 %v1753_v14  ;;  %1536 = vmatpush3.bf16.msra.mxu1 %v1752_v12 }
  0x86   : > { %1537 = vmatprep.subr.bf16.mxu1 %v1756_v15 }
  0x88   : > { %547 = vmatpush1.bf16.msra.mxu0 %v1755_v16 }
  0x89   : > { %548 = vmatprep.subr.bf16.mxu0 %v1757_v17  ;;  %1538 = vmatpush3.bf16.msra.mxu1 %v1756_v15 }
  0x8a   : > { %1539 = vmatprep.subr.bf16.mxu1 %v1760_v18 }
  0x8c   : > { %549 = vmatpush1.bf16.msra.mxu0 %v1759_v20 }
  0x8d   : > { %550 = vmatprep.subr.bf16.mxu0 %v1761_v22  ;;  %1540 = vmatpush3.bf16.msra.mxu1 %v1760_v18 }
  0x8e   : > { %1541 = vmatprep.subr.bf16.mxu1 %v1764_v24 }
  0x90   : > { %551 = vmatpush1.bf16.msra.mxu0 %v1763_v25 }
  0x91   : > { %552 = vmatprep.subr.bf16.mxu0 %v1765_v26  ;;  %1542 = vmatpush3.bf16.msra.mxu1 %v1764_v24 }
  0x92   : > { %1543 = vmatprep.subr.bf16.mxu1 %v1768_v27 }
  0x94   : > { %553 = vmatpush1.bf16.msra.mxu0 %v1767_v28 }
  0x95   : > { %1544 = vmatpush3.bf16.msra.mxu1 %v1768_v27 }
  0x97   : > { %571 = vmatmul.mubr.bf16.vlgmr.msra.gmra.mxu0 %v374_v23 }
  0x98   : > { %580 = vmatprep.mubr.bf16.mxu0 %v2037_v3  ;;  %1546 = vmatmul.mubr.bf16.vlgmr.msra.gmra.mxu1 %v375_v31 }
  0x99   : > { %1549 = vmatprep.mubr.bf16.mxu1 %v376_v34 }
  0x9f   : > { %581 = vmatmul.mubr.bf16.gmra.mxu0 %v375_v31 }
  0xa0   : > { %590 = vmatprep.mubr.bf16.mxu0 %v2037_v3  ;;  %1550 = vmatmul.mubr.bf16.gmra.mxu1 %v377_v37 }
  0xa7   : > { %591 = vmatmul.mubr.bf16.gmra.mxu0 %v376_v34 }
  0xa8   : > { %600 = vmatprep.mubr.bf16.mxu0 %v2037_v3 }
  0xaf   : > { %601 = vmatmul.mubr.bf16.gmra.mxu0 %v377_v37 }
 0x157   : > { %v572_v40 = vpop.f32.mrf.mxu0 }
 0x158   : > { %v2294_v42 = vpop.f32.mrf.mxu1  ;;  %v685_v63 = vadd.f32 %v2310_v50, %v572_v40 }
 0x159   : > { %v2292_v41 = vpop.f32.mrf.mxu0  ;;  %v965_v44 = vsel %vm960_vm1, %v2294_v42, -inf }
 0x15a   : > { %v904_v43 = vsel %vm901_vm0, %v2292_v41, -inf  ;;  %v983_v46 = vrot.slane %v965_v44, 4  ;;  %v2302_v48 = vpop.f32.mrf.mxu1  ;;  %v693_v15 = vmax.f32 %v685_v63, 0.0  ;;  %v775_v16 = vrot.slane %v2292_v41, 7 }
 0x15b   : > { %v912_v45 = vrot.slane %v904_v43, 4  ;;  %v576_v47 = vpop.f32.mrf.mxu0  ;;  %v963_v49 = vsel %vm960_vm1, %v2302_v48, -inf }
 0x15c   : > { %v984_v52 = vmax.f32 %v965_v44, %v983_v46  ;;  %v971_v53 = vrot.slane %v963_v49, 4  ;;  %v686_v55 = vadd.f32 %v2310_v50, %v576_v47  ;;  %v2315_v61 = vpop.f32.mrf.mxu1  ;;  %v702_v32 = vrot.slane %v693_v15, 4 }
 0x15d   : > { %v913_v51 = vmax.f32 %v904_v43, %v912_v45  ;;  %v578_v54 = vpop.f32.mrf.mxu0  ;;  %v966_v0 = vsel %vm960_vm1, %v2315_v61, -inf }
 0x15e   : > { %v905_v56 = vsel %vm901_vm0, %v578_v54, -inf  ;;  %v985_v58 = vrot.slane %v984_v52, 2  ;;  %v972_v59 = vmax.f32 %v963_v49, %v971_v53  ;;  %v694_v6 = vmax.f32 %v686_v55, 0.0  ;;  %v648_v22 = vpop.f32.mrf.mxu1 }
 0x15f   : > { %v914_v57 = vrot.slane %v913_v51, 2  ;;  %v918_v60 = vrot.slane %v905_v56, 4  ;;  %v582_v62 = vpop.f32.mrf.mxu0  ;;  %v776_v7 = vrot.slane %v578_v54, 7  ;;  %v989_v8 = vrot.slane %v966_v0, 4 }
 0x160   : > { %v687_v1 = vadd.f32 %v2310_v50, %v582_v62  ;;  %v986_v3 = vmax.f32 %v984_v52, %v985_v58  ;;  %v973_v4 = vrot.slane %v972_v59, 2  ;;  %v708_v23 = vrot.slane %v694_v6, 4 }
 0x161   : > { %v915_v2 = vmax.f32 %v913_v51, %v914_v57  ;;  %v919_v5 = vmax.f32 %v905_v56, %v918_v60  ;;  %v2322_v14 = vpop.f32.mrf.mxu0  ;;  %v990_v17 = vmax.f32 %v966_v0, %v989_v8  ;;  %v790_v28 = vsel %vm783_vm2, %v775_v16, %v776_v7 }
 0x162   : > { %v695_v9 = vmax.f32 %v687_v1, 0.0  ;;  %v987_v11 = vrot.slane %v986_v3, 1  ;;  %v974_v12 = vmax.f32 %v972_v59, %v973_v4  ;;  %v964_v30 = vsel %vm960_vm1, %v648_v22, -inf }
 0x163   : > { %v916_v10 = vrot.slane %v915_v2, 1  ;;  %v920_v13 = vrot.slane %v919_v5, 2  ;;  %v991_v24 = vrot.slane %v990_v17, 2  ;;  %v586_v31 = vpop.f32.mrf.mxu0  ;;  %v793_v34 = vadd.f32 %v790_v28, %v648_v22  ;;  %v2374_v28 = vpop.f32.mrf.mxu1 }
 0x164   : > { %v2328_v19 = vmax.f32 %v986_v3, %v987_v11  ;;  %v975_v20 = vrot.slane %v974_v12, 1  ;;  %v714_v25 = vrot.slane %v695_v9, 4  ;;  %v977_v36 = vrot.slane %v964_v30, 4 }
 0x165   : > { %v2326_v18 = vmax.f32 %v915_v2, %v916_v10  ;;  %v921_v21 = vmax.f32 %v919_v5, %v920_v13  ;;  %v992_v33 = vmax.f32 %v990_v17, %v991_v24  ;;  %v777_v37 = vrot.slane %v2322_v14, 7  ;;  %v2352_v51 = vpop.f32.mrf.mxu0 }
 0x166   : > { %v2330_v26 = vmax.f32 %v974_v12, %v975_v20  ;;  %v906_v38 = vsel %vm901_vm0, %v2322_v14, -inf  ;;  %v709_v40 = vmax.f32 %v694_v6, %v708_v23  ;;  %v808_v44 = vadd.f32 %v2339_v29, %v793_v34 }
 0x167   : > { %v922_v27 = vrot.slane %v921_v21, 1  ;;  %v993_v43 = vrot.slane %v992_v33, 1  ;;  %v715_v45 = vmax.f32 %v695_v9, %v714_v25  ;;  %v978_v46 = vmax.f32 %v964_v30, %v977_v36  ;;  %v592_v5 = vpop.f32.mrf.mxu0 }
 0x168   : > { %v789_v47 = vsel %vm783_vm2, %v776_v7, %v777_v37  ;;  %v924_v49 = vrot.slane %v906_v38, 4  ;;  %v703_v52 = vmax.f32 %v693_v15, %v702_v32  ;;  %v688_v54 = vadd.f32 %v2310_v50, %v586_v31 }
 0x169   : > { %v2343_v35 = vmax.f32 %v921_v21, %v922_v27  ;;  %v2354_v53 = vmax.f32 %v992_v33, %v993_v43  ;;  %v979_v55 = vrot.slane %v978_v46, 2  ;;  %v794_v56 = vadd.f32 %v2294_v42, %v789_v47  ;;  %v2368_v21 = vpop.f32.mrf.mxu0 }
 0x16a   : > { %v925_v57 = vmax.f32 %v906_v38, %v924_v49  ;;  %v710_v58 = vrot.slane %v709_v40, 2  ;;  %v816_v59 = vmax.f32 %v808_v44, 0.0  ;;  %v907_v60 = vsel %vm901_vm0, %v2352_v51, -inf }
 0x16b   : > { %v716_v62 = vrot.slane %v715_v45, 2  ;;  %v980_v63 = vmax.f32 %v978_v46, %v979_v55  ;;  %v704_v1 = vrot.slane %v703_v52, 2  ;;  %v809_v2 = vadd.f32 %v2339_v29, %v794_v56  ;;  %v596_v49 = vpop.f32.mrf.mxu0 }
 0x16c   : > { %v926_v0 = vrot.slane %v925_v57, 2  ;;  %v696_v3 = vmax.f32 %v688_v54, 0.0  ;;  %v930_v4 = vrot.slane %v907_v60, 4  ;;  %v711_v7 = vmax.f32 %v709_v40, %v710_v58 }
 0x16d   : > { %v981_v6 = vrot.slane %v980_v63, 1  ;;  %v827_v8 = vsel %vm823_vm3, %v816_v59, 0.0  ;;  %v778_v9 = vrot.slane %v2352_v51, 7  ;;  %v717_v11 = vmax.f32 %v715_v45, %v716_v62 }
 0x16e   : > { %v927_v42 = vmax.f32 %v925_v57, %v926_v0  ;;  %v931_v10 = vmax.f32 %v907_v60, %v930_v4  ;;  %v705_v14 = vmax.f32 %v703_v52, %v704_v1  ;;  %v817_v15 = vmax.f32 %v809_v2, 0.0  ;;  %v661_v60 = vpop.f32.mrf.mxu1  ;;  %v2394_v4 = vpop.f32.mrf.mxu0 }
 0x16f   : > { %v2366_v12 = vmax.f32 %v980_v63, %v981_v6  ;;  %v720_v17 = vrot.slane %v696_v3, 4  ;;  %v841_v22 = vrot.slane %v827_v8, 4  ;;  %v712_v24 = vrot.slane %v711_v7, 1 }
 0x170   : > { %v928_v13 = vrot.slane %v927_v42, 1  ;;  %v932_v20 = vrot.slane %v931_v10, 2  ;;  %v788_v25 = vsel %vm783_vm2, %v777_v37, %v778_v9  ;;  %v718_v30 = vrot.slane %v717_v11, 1 }
 0x171   : > { %v689_v31 = vadd.f32 %v2310_v50, %v592_v5  ;;  %v908_v32 = vsel %vm901_vm0, %v2368_v21, -inf  ;;  %v969_v33 = vsel %vm960_vm1, %v2374_v28, -inf  ;;  %v706_v34 = vrot.slane %v705_v14, 1 }
 0x172   : > { %v2370_v23 = vmax.f32 %v927_v42, %v928_v13  ;;  %v933_v27 = vmax.f32 %v931_v10, %v932_v20  ;;  %v828_v36 = vsel %vm823_vm3, %v817_v15, 0.0  ;;  %v721_v38 = vmax.f32 %v696_v3, %v720_v17 }
 0x173   : > { %v842_v40 = vmax.f32 %v827_v8, %v841_v22  ;;  %v795_v43 = vadd.f32 %v2315_v61, %v788_v25  ;;  %v936_v44 = vrot.slane %v908_v32, 4  ;;  %v713_v45 = vmax.f32 %v711_v7, %v712_v24 }
 0x174   : > { %v934_v37 = vrot.slane %v933_v27, 1  ;;  %v1007_v47 = vrot.slane %v969_v33, 4  ;;  %v719_v51 = vmax.f32 %v717_v11, %v718_v30  ;;  %v847_v52 = vrot.slane %v828_v36, 4  ;;  %v602_v30 = vpop.f32.mrf.mxu0 }
 0x175   : > { %v697_v54 = vmax.f32 %v689_v31, 0.0  ;;  %v937_v55 = vmax.f32 %v908_v32, %v936_v44  ;;  %v707_v56 = vmax.f32 %v705_v14, %v706_v34  ;;  %v722_v57 = vrot.slane %v721_v38, 2  ;;  %v2401_v14 = vpop.f32.mrf.mxu1 }
 0x176   : > { %v2386_v46 = vmax.f32 %v933_v27, %v934_v37  ;;  %v779_v58 = vrot.slane %v2368_v21, 7  ;;  %v1008_v59 = vmax.f32 %v969_v33, %v1007_v47  ;;  %v843_v62 = vrot.slane %v842_v40, 2 }
 0x177   : > { %v810_v61 = vadd.f32 %v2339_v29, %v795_v43  ;;  %v938_v63 = vrot.slane %v937_v55, 2  ;;  %v690_v0 = vadd.f32 %v2310_v50, %v596_v49  ;;  %v759_v1 = vsel %vm758_vm4, %v713_v45, %v707_v56 }
 0x178   : > { %v1009_v2 = vrot.slane %v1008_v59, 2  ;;  %v967_v3 = vsel %vm960_vm1, %v661_v60, -inf  ;;  %v2397_v5 = vsel %vm760_vm5, %v719_v51, %v759_v1  ;;  %v848_v6 = vmax.f32 %v828_v36, %v847_v52 }
 0x179   : > { %v726_v42 = vrot.slane %v697_v54, 4  ;;  %v939_v7 = vmax.f32 %v937_v55, %v938_v63  ;;  %v723_v8 = vmax.f32 %v721_v38, %v722_v57  ;;  %v787_v11 = vsel %vm783_vm2, %v778_v9, %v779_v58  ;;  %v604_v55 = vpop.f32.mrf.mxu0 }
 0x17a   : > { %v1010_v10 = vmax.f32 %v1008_v59, %v1009_v2  ;;  %v995_v13 = vrot.slane %v967_v3, 4  ;;  %v2403_v15 = vmax.f32 %v842_v40, %v843_v62  ;;  %v818_v17 = vmax.f32 %v810_v61, 0.0  ;;  %v664_v40 = vpop.f32.mrf.mxu1 }
 0x17b   : > { %v940_v20 = vrot.slane %v939_v7, 1  ;;  %v698_v21 = vmax.f32 %v690_v0, 0.0  ;;  %v780_v25 = vrot.slane %v2394_v4, 7  ;;  %v909_v27 = vsel %vm901_vm0, %v2394_v4, -inf }
 0x17c   : > { %v1011_v22 = vrot.slane %v1010_v10, 1  ;;  %v996_v24 = vmax.f32 %v967_v3, %v995_v13  ;;  %v849_v31 = vrot.slane %v848_v6, 2  ;;  %v727_v32 = vmax.f32 %v697_v54, %v726_v42 }
 0x17d   : > { %v2409_v9 = vmax.f32 %v939_v7, %v940_v20  ;;  %v796_v33 = vadd.f32 %v787_v11, %v661_v60  ;;  %v724_v34 = vrot.slane %v723_v8, 1  ;;  %v942_v37 = vrot.slane %v909_v27, 4  ;;  %v606_v11 = vpop.f32.mrf.mxu0 }
 0x17e   : > { %v2411_v36 = vmax.f32 %v1010_v10, %v1011_v22  ;;  %v997_v38 = vrot.slane %v996_v24, 2  ;;  %v829_v43 = vsel %vm823_vm3, %v818_v17, 0.0  ;;  %v732_v44 = vrot.slane %v698_v21, 4 }
 0x17f   : > { %v970_v45 = vsel %vm960_vm1, %v2401_v14, -inf  ;;  %v691_v47 = vadd.f32 %v2310_v50, %v602_v30  ;;  %v943_v51 = vmax.f32 %v909_v27, %v942_v37  ;;  %v786_v54 = vsel %vm783_vm2, %v779_v58, %v780_v25 }
 0x180   : > { %v998_v49 = vmax.f32 %v996_v24, %v997_v38  ;;  %v1013_v52 = vrot.slane %v970_v45, 4  ;;  %v728_v56 = vrot.slane %v727_v32, 2  ;;  %v811_v57 = vadd.f32 %v2339_v29, %v796_v33 }
 0x181   : > { %v699_v59 = vmax.f32 %v691_v47, 0.0  ;;  %v797_v60 = vadd.f32 %v786_v54, %v664_v40  ;;  %v944_v61 = vrot.slane %v943_v51, 2  ;;  %v968_v0 = vsel %vm960_vm1, %v664_v40, -inf }
 0x182   : > { %v999_v62 = vrot.slane %v998_v49, 1  ;;  %v1014_v63 = vmax.f32 %v970_v45, %v1013_v52  ;;  %v853_v1 = vrot.slane %v829_v43, 4  ;;  %v733_v2 = vmax.f32 %v698_v21, %v732_v44  ;;  %v608_v45 = vpop.f32.mrf.mxu0 }
 0x183   : > { %v738_v3 = vrot.slane %v699_v59, 4  ;;  %v812_v4 = vadd.f32 %v2339_v29, %v797_v60  ;;  %v945_v58 = vmax.f32 %v943_v51, %v944_v61  ;;  %v1001_v10 = vrot.slane %v968_v0, 4 }
 0x184   : > { %v2425_v42 = vmax.f32 %v998_v49, %v999_v62  ;;  %v1015_v7 = vrot.slane %v1014_v63, 2  ;;  %v2427_v13 = vmax.f32 %v848_v6, %v849_v31  ;;  %v2429_v17 = vmax.f32 %v727_v32, %v728_v56 }
 0x185   : > { %v819_v20 = vmax.f32 %v811_v57, 0.0  ;;  %v739_v22 = vmax.f32 %v699_v59, %v738_v3  ;;  %v946_v24 = vrot.slane %v945_v58, 1  ;;  %v1002_v30 = vmax.f32 %v968_v0, %v1001_v10 }
 0x186   : > { %v1016_v27 = vmax.f32 %v1014_v63, %v1015_v7  ;;  %v781_v33 = vrot.slane %v604_v55, 7  ;;  %v2431_v21 = vmax.f32 %v723_v8, %v724_v34  ;;  %v2433_v38 = vmax.f32 %v829_v43, %v853_v1 }
 0x187   : > { %v734_v37 = vrot.slane %v733_v2, 2  ;;  %v910_v40 = vsel %vm901_vm0, %v604_v55, -inf  ;;  %v2437_v44 = vmax.f32 %v945_v58, %v946_v24  ;;  %v820_v31 = vmax.f32 %v812_v4, 0.0 }
 0x188   : > { %v1017_v6 = vrot.slane %v1016_v27, 1  ;;  %v1003_v32 = vrot.slane %v1002_v30, 2  ;;  %v730_v47 = vrot.slane %v2429_v17, 1  ;;  %v830_v49 = vsel %vm823_vm3, %v819_v20, 0.0 }
 0x189   : > { %v785_v8 = vsel %vm783_vm2, %v780_v25, %v781_v33  ;;  %v948_v34 = vrot.slane %v910_v40, 4  ;;  %v740_v51 = vrot.slane %v739_v22, 2  ;;  %v735_v55 = vmax.f32 %v733_v2, %v734_v37 }
 0x18a   : > { %v2444_v43 = vmax.f32 %v1016_v27, %v1017_v6  ;;  %v1004_v52 = vmax.f32 %v1002_v30, %v1003_v32  ;;  %v798_v54 = vadd.f32 %v2374_v28, %v785_v8  ;;  %v692_v57 = vadd.f32 %v2310_v50, %v606_v11 }
 0x18b   : > { %v949_v56 = vmax.f32 %v910_v40, %v948_v34  ;;  %v782_v59 = vrot.slane %v608_v45, 7  ;;  %v859_v60 = vrot.slane %v830_v49, 4  ;;  %v831_v62 = vsel %vm823_vm3, %v820_v31, 0.0 }
 0x18c   : > { %v1005_v61 = vrot.slane %v1004_v52, 1  ;;  %v813_v25 = vadd.f32 %v2339_v29, %v798_v54  ;;  %v700_v0 = vmax.f32 %v692_v57, 0.0  ;;  %v911_v28 = vsel %vm901_vm0, %v608_v45, -inf }
 0x18d   : > { %v950_v63 = vrot.slane %v949_v56, 2  ;;  %v784_v1 = vsel %vm783_vm2, %v781_v33, %v782_v59  ;;  %v741_v50 = vmax.f32 %v739_v22, %v740_v51  ;;  %v791_v4 = vsel %vm783_vm2, %v782_v59, %v775_v16 }
 0x18e   : > { %v2455_v2 = vmax.f32 %v1004_v52, %v1005_v61  ;;  %v821_v3 = vmax.f32 %v813_v25, 0.0  ;;  %v736_v58 = vrot.slane %v735_v55, 1  ;;  %v744_v10 = vrot.slane %v700_v0, 4 }
 0x18f   : > { %v951_v7 = vmax.f32 %v949_v56, %v950_v63  ;;  %v792_v11 = vadd.f32 %v791_v4, %v2302_v48  ;;  %v865_v20 = vrot.slane %v831_v62, 4  ;;  %v799_v22 = vadd.f32 %v2401_v14, %v784_v1 }
 0x190   : > { %v832_v24 = vsel %vm823_vm3, %v821_v3, 0.0  ;;  %v954_v27 = vrot.slane %v911_v28, 4  ;;  %v745_v41 = vmax.f32 %v700_v0, %v744_v10  ;;  %v855_v16 = vrot.slane %v2433_v38, 2  ;;  %v701_v3 = vld [vmem:[#allocation2] sm:$0xff] }
 0x191   : > { %v871_v30 = vrot.slane %v832_v24, 4  ;;  %v952_v33 = vrot.slane %v951_v7, 1  ;;  %v807_v37 = vadd.f32 %v2339_v29, %v792_v11  ;;  %v742_v40 = vrot.slane %v741_v50, 1 }
 0x192   : > { %v814_v6 = vadd.f32 %v2339_v29, %v799_v22  ;;  %v955_v31 = vmax.f32 %v911_v28, %v954_v27  ;;  %v860_v48 = vmax.f32 %v830_v49, %v859_v60  ;;  %v746_v45 = vrot.slane %v745_v41, 2 }
 0x193   : > { %v2468_v32 = vmax.f32 %v951_v7, %v952_v33  ;;  %v815_v8 = vmax.f32 %v807_v37, 0.0  ;;  %v731_v34 = vmax.f32 %v2429_v17, %v730_v47  ;;  %v866_v14 = vmax.f32 %v831_v62, %v865_v20 }
 0x194   : > { %v822_v51 = vmax.f32 %v814_v6, 0.0  ;;  %v956_v52 = vrot.slane %v955_v31, 2  ;;  %v737_v54 = vmax.f32 %v735_v55, %v736_v58  ;;  %v872_v56 = vmax.f32 %v832_v24, %v871_v30 }
 0x195   : > { %v747_v57 = vmax.f32 %v745_v41, %v746_v45  ;;  %v826_v59 = vsel %vm823_vm3, %v815_v8, 0.0  ;;  %v743_v61 = vmax.f32 %v741_v50, %v742_v40  ;;  %v763_v25 = vsel %vm762_vm6, %v2431_v21, %v2397_v5 }
 0x196   : > { %v833_v29 = vsel %vm823_vm3, %v822_v51, 0.0  ;;  %v835_v49 = vrot.slane %v826_v59, 4  ;;  %v957_v60 = vmax.f32 %v955_v31, %v956_v52  ;;  %v861_v17 = vrot.slane %v860_v48, 2 }
 0x197   : > { %v748_v47 = vrot.slane %v747_v57, 1  ;;  %v877_v62 = vrot.slane %v833_v29, 4  ;;  %v765_v55 = vsel %vm764_vm7, %v731_v34, %v763_v25  ;;  %v867_v63 = vrot.slane %v866_v14, 2 }
 0x198   : > { %v836_v0 = vmax.f32 %v826_v59, %v835_v49  ;;  %v958_v1 = vrot.slane %v957_v60, 1  ;;  %v767_v28 = vsel %vm766_vm8, %v737_v54, %v765_v55  ;;  %v873_v50 = vrot.slane %v872_v56, 2 }
 0x199   : > { %v749_v39 = vmax.f32 %v747_v57, %v748_v47  ;;  %v878_v4 = vmax.f32 %v833_v29, %v877_v62  ;;  %v856_v58 = vmax.f32 %v2433_v38, %v855_v16  ;;  %v769_v7 = vsel %vm768_vm9, %v743_v61, %v767_v28  ;;  %v834_v29 = vld [vmem:[#allocation3] sm:$0xff] }
 0x19a   : > { %v837_v10 = vrot.slane %v836_v0, 2  ;;  %v959_v5 = vmax.f32 %v957_v60, %v958_v1  ;;  %v862_v21 = vmax.f32 %v860_v48, %v861_v17  ;;  %v845_v24 = vrot.slane %v2403_v15, 1 }
 0x19b   : > { %v771_v11 = vsel %vm770_vm10, %v749_v39, %v769_v7  ;;  %v879_v20 = vrot.slane %v878_v4, 2  ;;  %v868_v22 = vmax.f32 %v866_v14, %v867_v63  ;;  %v851_v33 = vrot.slane %v2427_v13, 1 }
 0x19c   : > { %v773_v27 = vmax.f32 %v701_v3, %v771_v11  ;;  %v838_v30 = vmax.f32 %v836_v0, %v837_v10  ;;  %v874_v41 = vmax.f32 %v872_v56, %v873_v50  ;;  %v857_v37 = vrot.slane %v856_v58, 1 }
 0x19d   : > { %v880_v38 = vmax.f32 %v878_v4, %v879_v20  ;;  %v863_v16 = vrot.slane %v862_v21, 1  ;;  %v846_v6 = vmax.f32 %v2403_v15, %v845_v24  ;;  %v869_v31 = vrot.slane %v868_v22, 1 }
 0x19e   : > { %774 = vst [vmem:[#allocation2] sm:$0xff] %v773_v27  ;;  %v839_v40 = vrot.slane %v838_v30, 1  ;;  %v852_v45 = vmax.f32 %v2427_v13, %v851_v33  ;;  %v875_v8 = vrot.slane %v874_v41, 1  ;;  %v858_v34 = vmax.f32 %v856_v58, %v857_v37 }
 0x19f   : > { %v881_v51 = vrot.slane %v880_v38, 1  ;;  %v864_v52 = vmax.f32 %v862_v21, %v863_v16  ;;  %v870_v56 = vmax.f32 %v868_v22, %v869_v31 }
 0x1a0   : > { %v840_v48 = vmax.f32 %v838_v30, %v839_v40  ;;  %v876_v59 = vmax.f32 %v874_v41, %v875_v8 }
 0x1a1   : > { %v882_v15 = vmax.f32 %v880_v38, %v881_v51 }
 0x1a2   : > { %v891_v14 = vsel %vm758_vm4, %v846_v6, %v840_v48 }
 0x1a3   : > { %v892_v54 = vsel %vm760_vm5, %v852_v45, %v891_v14 }
 0x1a4   : > { %v893_v57 = vsel %vm762_vm6, %v858_v34, %v892_v54 }
 0x1a5   : > { %v894_v61 = vsel %vm764_vm7, %v864_v52, %v893_v57 }
 0x1a6   : > { %v895_v49 = vsel %vm766_vm8, %v870_v56, %v894_v61 }
 0x1a7   : > { %v896_v13 = vsel %vm768_vm9, %v876_v59, %v895_v49  ;;  %1022 = sbr.rel (%p1474_p7) target bundleno = 444 (0x1bc), region = 72 }
 0x1a8   : > { %v897_v60 = vsel %vm770_vm10, %v882_v15, %v896_v13 }
 0x1a9   : > { %v899_v25 = vmax.f32 %v834_v29, %v897_v60 }
 0x1ab   : > { %900 = vst [vmem:[#allocation3] sm:$0xff] %v899_v25 }
 0x1ac   : > { %v1032_v17 = vsel %vm758_vm4, %v2366_v12, %v2330_v26  ;;  %v1023_v63 = vld [vmem:[#allocation4] sm:$0xff] }
 0x1ad   : > { %v1033_v47 = vsel %vm760_vm5, %v2328_v19, %v1032_v17  ;;  %v1475_v19 = vld [vmem:[%s2593_s3] ss:$0 sm:$0xff] }
 0x1ae   : > { %v1034_v62 = vsel %vm762_vm6, %v2354_v53, %v1033_v47 }
 0x1af   : > { %v1035_v55 = vsel %vm764_vm7, %v2425_v42, %v1034_v62 }
 0x1b0   : > { %v1036_v0 = vsel %vm766_vm8, %v2455_v2, %v1035_v55 }
 0x1b1   : > { %v1037_v1 = vsel %vm768_vm9, %v2411_v36, %v1036_v0 }
 0x1b2   : > { %v1038_v28 = vsel %vm770_vm10, %v2444_v43, %v1037_v1  ;;  %v1050_v53 = vld [vmem:[#allocation3] sm:$0xff] }
 0x1b3   : > { %v1040_v26 = vadd.f32 %v1038_v28, %v1023_v63 }
 0x1b5   : > { %v1048_v12 = vadd.f32 %v1475_v19, %v1040_v26 }
 0x1b7   : > { %v1049_v50 = vmax.f32 %v1048_v12, 0.0 }
 0x1b9   : > { %v1051_v3 = vmax.f32 %v1050_v53, %v1049_v50 }
 0x1bb   : > { %1052 = vst [vmem:[#allocation3] sm:$0xff] %v1051_v3 }
 0x1bc PF: > { %v1061_v42 = vsel %vm758_vm4, %v2343_v35, %v2326_v18  ;;  %p1476_p5 = scmp.ne.s32.totalorder %s2007_s30, 1 }
 0x1bd   : > { %v1062_v36 = vsel %vm760_vm5, %v2370_v23, %v1061_v42 }
 0x1be   : > { %v1063_v43 = vsel %vm762_vm6, %v2386_v46, %v1062_v36 }
 0x1bf   : > { %v1064_v2 = vsel %vm764_vm7, %v2409_v9, %v1063_v43  ;;  %1073 = sbr.rel (%p1476_p5) target bundleno = 994 (0x3e2), region = 76 }
 0x1c0   : > { %v1065_v39 = vsel %vm766_vm8, %v2437_v44, %v1064_v2 }
 0x1c1   : > { %v1066_v4 = vsel %vm768_vm9, %v2468_v32, %v1065_v39 }
 0x1c2   : > { %v1067_v58 = vsel %vm770_vm10, %v959_v5, %v1066_v4 }
 0x1c3   : > { %1069 = vst [vmem:[#allocation4] sm:$0xff] %v1067_v58 }
 0x1c4   : > { %v1769_v18 = vld [vmem:[#allocation11 + $0x38] sm:$0xff]   ;;  %v2038_v35 = vmov 0.0   ;;  %v1771_v46 = vld [vmem:[#allocation11 + $0x30] sm:$0xff]   ;;  %vm2039_vm11 = vmmov 0   ;;  %v1773_v44 = vld [vmem:[#allocation11 + $0x28] sm:$0xff]  }
 0x1c5   : > { %1553 = vmatprep.subr.bf16.mxu0 %v2038_v35  ;;  %1573 = vmatprep.subr.bf16.mxu1 %v2038_v35  ;;  %v1770_v23 = vld [vmem:[#allocation10 + $0x38] sm:$0xff]   ;;  %v1772_v9 = vld [vmem:[#allocation10 + $0x30] sm:$0xff]   ;;  %v1774_v32 = vld [vmem:[#allocation10 + $0x28] sm:$0xff]  }
 0x1c6   : > { %1554 = vmatpush3.bf16.msra.mxu0 %v1769_v18  ;;  %1569 = vmatprep.mubr.msk.bf16.mxu0 %vm2039_vm11, %v2038_v35  ;;  %v1775_v7 = vld [vmem:[#allocation11 + $0x20] sm:$0xff]   ;;  %v1777_v5 = vld [vmem:[#allocation11 + $0x18] sm:$0xff]   ;;  %v1779_v11 = vld [vmem:[#allocation11 + $0x10] sm:$0xff]  }
 0x1c7   : > { %1574 = vmatpush3.bf16.msra.mxu1 %v1770_v23  ;;  %1555 = vmatprep.subr.bf16.mxu0 %v2038_v35  ;;  %v1776_v10 = vld [vmem:[#allocation10 + $0x20] sm:$0xff]   ;;  %v1778_v21 = vld [vmem:[#allocation10 + $0x18] sm:$0xff]   ;;  %v1780_v20 = vld [vmem:[#allocation10 + $0x10] sm:$0xff]  }
 0x1c8   : > { %1575 = vmatprep.subr.bf16.mxu1 %v2038_v35  ;;  %1589 = vmatprep.mubr.msk.bf16.mxu1 %vm2039_vm11, %v2038_v35  ;;  %v1781_v24 = vld [vmem:[#allocation11 + $0x8] sm:$0xff]   ;;  %v1783_v27 = vld [vmem:[#allocation11] sm:$0xff]   ;;  %v1092_v30 = vld [vmem:[#allocation3] sm:$0xff] }
 0x1c9   : > { %v1782_v22 = vld [vmem:[#allocation10 + $0x8] sm:$0xff]   ;;  %v1784_v33 = vld [vmem:[#allocation10] sm:$0xff]   ;;  %v1093_v37 = vpack.c.bf16 %v1092_v30, %v1092_v30 }
 0x1ca   : > { %1556 = vmatpush3.bf16.msra.mxu0 %v1771_v46  ;;  %v1074_v41 = vld [vmem:[#allocation2] sm:$0xff] }
 0x1cb   : > { %1576 = vmatpush3.bf16.msra.mxu1 %v1772_v9  ;;  %1557 = vmatprep.subr.bf16.mxu0 %v2038_v35  ;;  %v1075_v40 = vpack.c.bf16 %v1074_v41, %v1074_v41  ;;  %v1493_v6 = vld [vmem:[%s2596_s6] ss:$0 sm:$0xff] }
 0x1cc   : > { %1577 = vmatprep.subr.bf16.mxu1 %v2038_v35 }
 0x1ce   : > { %1558 = vmatpush3.bf16.msra.mxu0 %v1773_v44 }
 0x1cf   : > { %1578 = vmatpush3.bf16.msra.mxu1 %v1774_v32  ;;  %1559 = vmatprep.subr.bf16.mxu0 %v2038_v35 }
 0x1d0   : > { %1579 = vmatprep.subr.bf16.mxu1 %v2038_v35 }
 0x1d2   : > { %1560 = vmatpush3.bf16.msra.mxu0 %v1775_v7 }
 0x1d3   : > { %1580 = vmatpush3.bf16.msra.mxu1 %v1776_v10  ;;  %1561 = vmatprep.subr.bf16.mxu0 %v2038_v35 }
 0x1d4   : > { %1581 = vmatprep.subr.bf16.mxu1 %v2038_v35 }
 0x1d6   : > { %1562 = vmatpush3.bf16.msra.mxu0 %v1777_v5 }
 0x1d7   : > { %1582 = vmatpush3.bf16.msra.mxu1 %v1778_v21  ;;  %1563 = vmatprep.subr.bf16.mxu0 %v2038_v35 }
 0x1d8   : > { %1583 = vmatprep.subr.bf16.mxu1 %v2038_v35 }
 0x1da   : > { %1564 = vmatpush3.bf16.msra.mxu0 %v1779_v11 }
 0x1db   : > { %1584 = vmatpush3.bf16.msra.mxu1 %v1780_v20  ;;  %1565 = vmatprep.subr.bf16.mxu0 %v2038_v35 }
 0x1dc   : > { %1585 = vmatprep.subr.bf16.mxu1 %v2038_v35 }
 0x1de   : > { %1566 = vmatpush3.bf16.msra.mxu0 %v1781_v24 }
 0x1df   : > { %1586 = vmatpush3.bf16.msra.mxu1 %v1782_v22  ;;  %1567 = vmatprep.subr.bf16.mxu0 %v2038_v35 }
 0x1e0   : > { %1587 = vmatprep.subr.bf16.mxu1 %v2038_v35 }
 0x1e2   : > { %1568 = vmatpush3.bf16.msra.mxu0 %v1783_v27 }
 0x1e3   : > { %1588 = vmatpush3.bf16.msra.mxu1 %v1784_v33 }
 0x1e5   : > { %1570 = vmatmul.mubr.bf16.vlgmr.msra.gmra.mxu0 %v1093_v37 }
 0x1e6   : > { %1590 = vmatmul.mubr.bf16.vlgmr.msra.gmra.mxu1 %v1075_v40 }
 0x2a5   : > { %v1192_v38 = vpop.f32.mrf.mxu0 }
 0x2a6   : > { %v1280_v16 = vpop.f32.mrf.mxu1 }
 0x2a7   : > { %v1281_v31 = vadd.f32 %v1280_v16, %v1192_v38  ;;  %v1571_v48 = vpop.f32.mrf.mxu0 }
 0x2a8   : > { %v1591_v45 = vpop.f32.mrf.mxu1 }
 0x2a9   : > { %v1195_v8 = vpop.f32.mrf.mxu0  ;;  %v1293_v34 = vadd.f32 %v1493_v6, %v1281_v31 }
 0x2aa   : > { %v1283_v51 = vpop.f32.mrf.mxu1 }
 0x2ab   : > { %1294 = vmax.xlane.f32.xlu0 %v1293_v34  ;;  %v1572_v14 = vpop.f32.mrf.mxu0 }
 0x2ac   : > { %v1592_v52 = vpop.f32.mrf.mxu1 }
 0x334   : > { %v1295_v54 = vpop.xlane.xlu0 %1294 }
 0x335   : > { %v1296_v56 = vsub.f32 %v1293_v34, %v1295_v54 }
 0x337   : > { %v1297_v57 = vmul.f32 1.442695, %v1296_v56 }
 0x339   : > { %1785 = vpow2.f32 %v1297_v57 }
 0x346   : > { %v1786_v59 = vpop.eup %1785 }
 0x347   : > { %1299 = vadd.xlane.f32.xlu0 %v1786_v59 }
 0x3d0   : > { %v1300_v61 = vpop.xlane.xlu0 %1299 }
 0x3d1   : > { %1787 = vrcp.f32 %v1300_v61 }
 0x3de   : > { %v1788_v29 = vpop.eup %1787 }
 0x3df   : > { %v1302_v15 = vmul.f32 %v1788_v29, %v1786_v59 }
 0x3e1   : > { %1303 = vst [vmem:[%s356_s18] sm:$0xff] %v1302_v15 }
 0x3e2 PF: > { %s2638_s20 = sld [smem:[#allocation21_spill]]  ;;  %s1495_s5 = sshll.u32 %s2011_s8, 7 }
 0x3e3   : > { %s2639_s14 = sld [smem:[#allocation28_spill]]  ;;  %s1318_s17 = sshll.u32 %s356_s18, 4  ;;  %s1319_s17 = int_to_ptr.vmem [resolvable:$true] %s1318_s17 }
 0x3e4   : > { %s1305_s16 = scalar_lea.sflag [#allocation7], %s354_s4  ;;  %s1895_s15 = scalar_lea.vmem %s1319_s17, 128 }
 0x3e5   : > { %p1896_p12 = scmp.ne.s32.totalorder %s1319_s17, %s1895_s15  ;;  %s2040_s21 = smov [#allocation13]  }
 0x3e6   : > { %s1899_s12 = sshll.u32 %s2040_s21, 4  ;;  %s1900_s12 = int_to_ptr.vmem [resolvable:$false] %s1899_s12 }
 0x3e7   : > { %s1901_s22 = scalar_lea.vmem %s1900_s12, 256  ;;  %p1902_p6 = scmp.lt.s32.totalorder %s1319_s17, %s1900_s12 }
 0x3e8   : > { %p2640_p10 = scmp.ne.s32.totalorder %s2638_s20, 0  ;;  %p1903_p1 = scmp.lt.s32.totalorder %s1901_s22, %s1895_s15 }
 0x3e9   : > { %s1316_s24 = scalar_lea.hbm %s2639_s14, %s1495_s5 }
 0x3ea   : > { %p1897_p3 = pnand %p1896_p12, %p2640_p10  ;;  %p1904_p4 = por %p1903_p1, %p1902_p6 }
 0x3ec   : > { %p1898_p13 = pneg %p1897_p3 }
 0x3ee   : > { %p1905_p2 = pnand %p1904_p4, %p1898_p13 }
 0x3f0   : > { %1908 = shalt.err (!%p1905_p2)
}
 0x3f1   : > { %s1909_s8 = scalar_lea.hbm %s1316_s24, 128  ;;  %s1913_s18 = scalar_lea.hbm %s2639_s14, 512 }
 0x3f2   : > { %p1910_p9 = scmp.ne.s32.totalorder %s1316_s24, %s1909_s8  ;;  %p1914_p0 = scmp.lt.s32.totalorder %s1316_s24, %s2639_s14 }
 0x3f3   : > { %p1915_p7 = scmp.lt.s32.totalorder %s1913_s18, %s1909_s8 }
 0x3f4   : > { %p1911_p8 = pnand %p1910_p9, %p2640_p10 }
 0x3f5   : > { %p1916_p5 = por %p1915_p7, %p1914_p0 }
 0x3f6   : > { %p1912_p11 = pneg %p1911_p8 }
 0x3f8   : > { %p1917_p12 = pnand %p1916_p5, %p1912_p11 }
 0x3fa   : > { %1920 = shalt.err (!%p1917_p12)
}
 0x3fb   : > { %1607 = dma.vmem_to_hbm [thread:$0]  (%p2640_p10), %s1319_s17, 128, %s1316_s24, %s1305_s16  }
 0x3fc PF: > { %s2641_s30 = sld [smem:[#allocation20_spill]] }
 0x3fd   : > { %s2642_s1 = sld [smem:[#allocation18_spill]] }
 0x3fe   : > { %s2643_s5 = sld [smem:[#allocation22_spill]] }
 0x402   : > { %p1634_p3 = scmp.ge.s32.totalorder %s2641_s30, 2 }
 0x403   : > { %s1330_s27 = sand.u32 1, %s2642_s1  }
 0x404   : > { %p2644_p13 = scmp.ne.s32.totalorder %s2643_s5, 0  ;;  %s1331_s19 = scalar_lea.sflag [#allocation7], %s1330_s27 }
 0x406   : > { %p1624_p6 = pnand %p1634_p3, %p2644_p13 }
 0x408   : > { %p1625_p1 = pneg %p1624_p6 }
 0x40a   : > { %1978 = dma.done.wait (%p1625_p1), %s1331_s19, 128  }
 0x40b   : > { %1980 = vsyncadd (%p1625_p1), %s1331_s19, 4294967168  ;;  %s25_s11 = sadd.s32 1, %s2641_s30   ;;  %s2645_s30 = sld [smem:[#allocation19_spill]] }
 0x40c   : > { %p22_p4 = scmp.ge.s32.totalorder %s25_s11, 10   ;;  %s2646_s9 = sld [smem:[#allocation23_spill]] }
 0x40d   : > { %s2647_s20 = sld [smem:[#allocation24_spill]]  ;;  %s2648_s24 = smov %s1987_s25 }
 0x40e   : > { %s2649_s25 = smov %s1991_s26  ;;  %s2650_s26 = smov %s2237_s13 }
 0x40f   : > { %s2651_s27 = smov %s1999_s28  ;;  %s2652_s28 = smov %s2003_s29 }
 0x410   : > { %s2653_s29 = smov %s2242_s7  ;;  %s2654_s8 = smov %s2019_s10 }
 0x411   :  { %24 = sbr.rel (!%p22_p4) target bundleno = 16 (0x10), region = 117 }
 0x413   : > { %s2655_s10 = smov %s2647_s20 }
 0x416   :  { %1336 = vsyncpa [#allocation6], 1 }
 0x417   :  { %1338 = vsyncpa [#allocation6 + $0x1], 1 }
 0x418   :  { %1339 = vsyncpa [#allocation9], 1 }
 0x419   :  { %1340 = vsyncpa [#allocation12], 1 }
 0x41a   :  { %1341 = vsyncpa [#allocation7], 1 }
 0x41b   :  { %1343 = vsyncpa [#allocation7 + $0x1], 1 }

</bundles_post_ra>
